<compile_context>
chip_gen: v6e
topology: v6e:2x2x1
jax: 0.10.0
libtpu: 0.0.40
codegen_flags: <defaults>
</compile_context>

<pallas_src>
import math
import functools

import jax
import jax.numpy as jnp
import numpy as np
from jax.experimental import pallas as pl
from jax.experimental.pallas import tpu as pltpu

# ---------------- hyperparameters (small, consistent with the module) ----------------
SEQ = 8          # sequence length S
BATCH = 2        # batch size B
D_MODEL = 32     # d_model
NHEAD = 4        # nhead
DIM_FF = 64      # dim_feedforward
EPS = 1e-5       # LayerNorm eps (PyTorch default)
NEG_INF = -1e30  # additive mask value (cross-batch + padded keys)


# ---------------- Pallas kernel ----------------
def encoder_layer_kernel(x_ref, p_ref, kpad_ref,
                         wqk_ref, wv_ref, wo_ref, w1_ref, w2_ref,
                         bqk_ref, b1_ref, bd_ref, out_ref, *, nhead, batch):
    N, D = x_ref.shape                   # N = S*B tokens (s-major, b-minor), D = d_model
    dh = D // nhead
    scale = 1.0 / math.sqrt(dh)

    x = x_ref[...]                       # (N, D)  value input
    qk_in = x + p_ref[...]               # q = k = src + pos ; value = src

    bd = bd_ref[...]                     # (8, D) = [bv; bo; b2; g1; be1; g2; be2; 0]
    b_v, b_o, b_2 = bd[0:1, :], bd[1:2, :], bd[2:3, :]
    g1, be1, g2, be2 = bd[3:4, :], bd[4:5, :], bd[5:6, :], bd[6:7, :]

    # ---- in-projections: one fused (D,2D) matmul for Q&K, one (D,D) for V ----------
    qk = jnp.dot(qk_in, wqk_ref[...], preferred_element_type=jnp.float32) + bqk_ref[...]  # (N, 2D)
    v = jnp.dot(x, wv_ref[...], preferred_element_type=jnp.float32) + b_v                 # (N, D)

    # ---- head split: one reshape + one einshape relayout per tensor ----------------
    qk_h = pltpu.einshape("nhd->hnd", jnp.reshape(qk, (N, 2 * nhead, dh)))  # (2H, N, dh)
    q_h = qk_h[:nhead]                                                       # (H, N, dh)
    k_h = qk_h[nhead:]                                                       # (H, N, dh)
    v_h = pltpu.einshape("nhd->hnd", jnp.reshape(v, (N, nhead, dh)))         # (H, N, dh)

    # ---- additive mask built in-kernel: cross-batch pairs + padded keys ------------
    row_b = jax.lax.broadcasted_iota(jnp.int32, (N, N), 0) % batch
    col_b = jax.lax.broadcasted_iota(jnp.int32, (N, N), 1) % batch
    allowed = (row_b == col_b) & (kpad_ref[...] == 0.0)                      # (N, N)
    mask = jnp.where(allowed, 0.0, NEG_INF).astype(jnp.float32)

    # ---- head-batched attention over ALL tokens at once ----------------------------
    s = jax.lax.dot_general(q_h, k_h, (((2,), (2,)), ((0,), (0,))),
                            preferred_element_type=jnp.float32) * scale      # (H, N, N)
    s = s + mask[None, :, :]
    s = s - jnp.max(s, axis=-1, keepdims=True)                               # stable softmax
    e = jnp.exp(s)
    # exact reciprocal: approx=True is too coarse for the 1e-4 f32 comparison
    a = e * pl.reciprocal(jnp.sum(e, axis=-1, keepdims=True), approx=False)
    ctx = jax.lax.dot_general(a, v_h, (((2,), (1,)), ((0,), (0,))),
                              preferred_element_type=jnp.float32)            # (H, N, dh)

    # ---- fused out-projection: one relayout back to (N, D), ONE K=D matmul ---------
    ctx_nd = jnp.reshape(pltpu.einshape("hnd->nhd", ctx), (N, D))            # (N, D)
    attn = jnp.dot(ctx_nd, wo_ref[...], preferred_element_type=jnp.float32) + b_o

    # ---- residual + LayerNorm1 (dropout1 = identity) -------------------------------
    h1 = x + attn
    mu1 = jnp.mean(h1, axis=-1, keepdims=True)
    var1 = jnp.mean(h1 * h1, axis=-1, keepdims=True) - mu1 * mu1             # E[x^2]-E[x]^2
    h1 = (h1 - mu1) * jax.lax.rsqrt(var1 + EPS) * g1 + be1

    # ---- FFN: linear2(relu(linear1(h1))) (dropout = identity) ----------------------
    f = jnp.dot(h1, w1_ref[...], preferred_element_type=jnp.float32) + b1_ref[...]
    f = jnp.maximum(f, 0.0)                                                  # activation = relu
    f = jnp.dot(f, w2_ref[...], preferred_element_type=jnp.float32) + b_2

    # ---- residual + LayerNorm2 (dropout2 = identity) -------------------------------
    h2 = h1 + f
    mu2 = jnp.mean(h2, axis=-1, keepdims=True)
    var2 = jnp.mean(h2 * h2, axis=-1, keepdims=True) - mu2 * mu2
    out_ref[...] = (h2 - mu2) * jax.lax.rsqrt(var2 + EPS) * g2 + be2


# ---------------- one-time parameter packing (hoisted out of the forward path) -------
def pack_params(tp):
    """Torch-layout params -> kernel-layout slabs. Call ONCE at init."""
    D = tp["out_proj_weight"].shape[0]
    wq_t, wk_t, wv_t = jnp.split(tp["in_proj_weight"], 3, axis=0)   # torch Linear: (out, in)
    bq, bk, bv = jnp.split(tp["in_proj_bias"], 3)
    packed = {
        "w_qk": jnp.concatenate([wq_t.T, wk_t.T], axis=1),                   # (D, 2D)
        "w_v": wv_t.T,                                                       # (D, D)
        "w_o": tp["out_proj_weight"].T,                                      # (D, D)
        "w_1": tp["w1"].T,                                                   # (D, FF)
        "w_2": tp["w2"].T,                                                   # (FF, D)
        "b_qk": jnp.concatenate([bq, bk]).reshape(1, 2 * D),                 # (1, 2D)
        "b_1": tp["b1"].reshape(1, -1),                                      # (1, FF)
        "bd": jnp.stack([bv, tp["out_proj_bias"], tp["b2"], tp["g1"], tp["be1"],
                         tp["g2"], tp["be2"], jnp.zeros_like(bv)], axis=0),  # (8, D)
    }
    return jax.tree_util.tree_map(lambda a: a.astype(jnp.float32), packed)


# ---------------- forward wrapper (only free reshapes + the pallas_call) --------------
@jax.jit
def transformer_encoder_layer(src, pos, key_padding_mask, packed):
    """src, pos: (S, B, D) float32;  key_padding_mask: (B, S) bool (True = pad)."""
    S, B, D = src.shape
    N = S * B

    # Free row-major flattening (no transpose / extra HBM pass): row i = (s=i//B, b=i%B).
    x_flat = jnp.reshape(src, (N, D)).astype(jnp.float32)
    p_flat = jnp.reshape(pos, (N, D)).astype(jnp.float32)
    # Pad flag of key token j (j = s*B + b -> batch j % B): 1.0 = padded.
    kpad_row = jnp.reshape(key_padding_mask.T, (1, N)).astype(jnp.float32)

    out_flat = pl.pallas_call(
        functools.partial(encoder_layer_kernel, nhead=NHEAD, batch=B),
        out_shape=jax.ShapeDtypeStruct((N, D), jnp.float32),
        # gridless: the whole problem (~20 KB) is resident in VMEM on all generations
    )(x_flat, p_flat, kpad_row,
      packed["w_qk"], packed["w_v"], packed["w_o"], packed["w_1"], packed["w_2"],
      packed["b_qk"], packed["b_1"], packed["bd"])

    return jnp.reshape(out_flat, (S, B, D))


# ---------------- pure-JAX reference (mirrors PyTorch semantics) ----------------
def reference_forward(src, pos, key_padding_mask, tp):
    S, B, D = src.shape
    H, dh = NHEAD, D // NHEAD
    qk = src + pos
    wq, wk, wv = jnp.split(tp["in_proj_weight"], 3, axis=0)
    bq, bk, bv = jnp.split(tp["in_proj_bias"], 3)
    q = qk @ wq.T + bq
    k = qk @ wk.T + bk
    v = src @ wv.T + bv

    def to_heads(t):
        return t.reshape(S, B, H, dh).transpose(1, 2, 0, 3)     # (B, H, S, dh)

    qh, kh, vh = to_heads(q), to_heads(k), to_heads(v)
    scores = jnp.einsum("bhqd,bhkd->bhqk", qh, kh) / math.sqrt(dh)
    scores = scores + jnp.where(key_padding_mask, NEG_INF, 0.0)[:, None, None, :]
    a = jax.nn.softmax(scores, axis=-1)
    o = jnp.einsum("bhqk,bhkd->bhqd", a, vh).transpose(2, 0, 1, 3).reshape(S, B, D)
    attn = o @ tp["out_proj_weight"].T + tp["out_proj_bias"]

    def layernorm(t, g, b):
        mu = jnp.mean(t, axis=-1, keepdims=True)
        var = jnp.mean((t - mu) ** 2, axis=-1, keepdims=True)
        return (t - mu) * jax.lax.rsqrt(var + EPS) * g + b

    h1 = layernorm(src + attn, tp["g1"], tp["be1"])
    f = jnp.maximum(h1 @ tp["w1"].T + tp["b1"], 0.0) @ tp["w2"].T + tp["b2"]
    return layernorm(h1 + f, tp["g2"], tp["be2"])


# ---------------- main ----------------
if __name__ == "__main__":
    key = jax.random.PRNGKey(0)
    ks = jax.random.split(key, 16)
    D, FF = D_MODEL, DIM_FF

    # deterministic synthetic parameters (PyTorch layout: Linear weight is (out, in))
    tp = {
        "in_proj_weight": 0.05 * jax.random.normal(ks[0], (3 * D, D), jnp.float32),
        "in_proj_bias":   0.05 * jax.random.normal(ks[1], (3 * D,), jnp.float32),
        "out_proj_weight": 0.05 * jax.random.normal(ks[2], (D, D), jnp.float32),
        "out_proj_bias":   0.05 * jax.random.normal(ks[3], (D,), jnp.float32),
        "w1": 0.05 * jax.random.normal(ks[4], (FF, D), jnp.float32),
        "b1": 0.05 * jax.random.normal(ks[5], (FF,), jnp.float32),
        "w2": 0.05 * jax.random.normal(ks[6], (D, FF), jnp.float32),
        "b2": 0.05 * jax.random.normal(ks[7], (D,), jnp.float32),
        "g1": 1.0 + 0.05 * jax.random.normal(ks[8], (D,), jnp.float32),
        "be1": 0.05 * jax.random.normal(ks[9], (D,), jnp.float32),
        "g2": 1.0 + 0.05 * jax.random.normal(ks[10], (D,), jnp.float32),
        "be2": 0.05 * jax.random.normal(ks[11], (D,), jnp.float32),
    }

    src = jax.random.normal(ks[12], (SEQ, BATCH, D), jnp.float32)
    pos = jax.random.normal(ks[13], (SEQ, BATCH, D), jnp.float32)
    # key_padding_mask (B, S): True = padded key; pad the last two keys of batch 1
    kpm = jnp.zeros((BATCH, SEQ), dtype=bool).at[1, -2:].set(True)

    packed = pack_params(tp)                       # once, at "init" (not per forward)

    out = transformer_encoder_layer(src, pos, kpm, packed)
    out = jax.block_until_ready(out)

    ref = jax.block_until_ready(reference_forward(src, pos, kpm, tp))
    np.testing.assert_allclose(np.asarray(out), np.asarray(ref), atol=1e-4, rtol=1e-4)

    print("KERNEL_OK")
</pallas_src>

<mosaic_0001>
module attributes {stable_mosaic.version = 11 : i64} {
  func.func @encoder_layer_kernel(%arg0: memref<16x32xf32, #tpu.memory_space<vmem>>, %arg1: memref<16x32xf32, #tpu.memory_space<vmem>>, %arg2: memref<1x16xf32, #tpu.memory_space<vmem>>, %arg3: memref<32x64xf32, #tpu.memory_space<vmem>>, %arg4: memref<32x32xf32, #tpu.memory_space<vmem>>, %arg5: memref<32x32xf32, #tpu.memory_space<vmem>>, %arg6: memref<32x64xf32, #tpu.memory_space<vmem>>, %arg7: memref<64x32xf32, #tpu.memory_space<vmem>>, %arg8: memref<1x64xf32, #tpu.memory_space<vmem>>, %arg9: memref<1x64xf32, #tpu.memory_space<vmem>>, %arg10: memref<8x32xf32, #tpu.memory_space<vmem>>, %arg11: memref<16x32xf32, #tpu.memory_space<vmem>>) attributes {dimension_semantics = [], scalar_prefetch = 0 : i64, scratch_operands = 0 : i64, tpu.core_type = #tpu.core_type<tc>} {
    %c0 = arith.constant 0 : index
    %c0_0 = arith.constant 0 : index
    %0 = vector.load %arg0[%c0, %c0_0] : memref<16x32xf32, #tpu.memory_space<vmem>>, vector<16x32xf32>
    %c0_1 = arith.constant 0 : index
    %c0_2 = arith.constant 0 : index
    %1 = vector.load %arg1[%c0_1, %c0_2] : memref<16x32xf32, #tpu.memory_space<vmem>>, vector<16x32xf32>
    %2 = arith.addf %0, %1 : vector<16x32xf32>
    %c0_3 = arith.constant 0 : index
    %c0_4 = arith.constant 0 : index
    %3 = vector.load %arg10[%c0_3, %c0_4] : memref<8x32xf32, #tpu.memory_space<vmem>>, vector<8x32xf32>
    %4 = vector.extract_strided_slice %3 {offsets = [0, 0], sizes = [1, 32], strides = [1, 1]} : vector<8x32xf32> to vector<1x32xf32>
    %5 = vector.extract_strided_slice %3 {offsets = [1, 0], sizes = [1, 32], strides = [1, 1]} : vector<8x32xf32> to vector<1x32xf32>
    %6 = vector.extract_strided_slice %3 {offsets = [2, 0], sizes = [1, 32], strides = [1, 1]} : vector<8x32xf32> to vector<1x32xf32>
    %7 = vector.extract_strided_slice %3 {offsets = [3, 0], sizes = [1, 32], strides = [1, 1]} : vector<8x32xf32> to vector<1x32xf32>
    %8 = vector.extract_strided_slice %3 {offsets = [4, 0], sizes = [1, 32], strides = [1, 1]} : vector<8x32xf32> to vector<1x32xf32>
    %9 = vector.extract_strided_slice %3 {offsets = [5, 0], sizes = [1, 32], strides = [1, 1]} : vector<8x32xf32> to vector<1x32xf32>
    %10 = vector.extract_strided_slice %3 {offsets = [6, 0], sizes = [1, 32], strides = [1, 1]} : vector<8x32xf32> to vector<1x32xf32>
    %c0_5 = arith.constant 0 : index
    %c0_6 = arith.constant 0 : index
    %11 = vector.load %arg3[%c0_5, %c0_6] : memref<32x64xf32, #tpu.memory_space<vmem>>, vector<32x64xf32>
    %cst = arith.constant dense<0.000000e+00> : vector<16x64xf32>
    %12 = tpu.matmul %2, %11, %cst {dimension_numbers = #tpu.dot_dimension_numbers<[1], [0], [0], [1], [0, 0, 1, 1], [], []>} : vector<16x32xf32>, vector<32x64xf32>, vector<16x64xf32> -> vector<16x64xf32>
    %c0_7 = arith.constant 0 : index
    %c0_8 = arith.constant 0 : index
    %13 = vector.load %arg8[%c0_7, %c0_8] : memref<1x64xf32, #tpu.memory_space<vmem>>, vector<1x64xf32>
    %14 = vector.broadcast %13 : vector<1x64xf32> to vector<16x64xf32>
    %15 = arith.addf %12, %14 : vector<16x64xf32>
    %c0_9 = arith.constant 0 : index
    %c0_10 = arith.constant 0 : index
    %16 = vector.load %arg4[%c0_9, %c0_10] : memref<32x32xf32, #tpu.memory_space<vmem>>, vector<32x32xf32>
    %cst_11 = arith.constant dense<0.000000e+00> : vector<16x32xf32>
    %17 = tpu.matmul %0, %16, %cst_11 {dimension_numbers = #tpu.dot_dimension_numbers<[1], [0], [0], [1], [0, 0, 1, 1], [], []>} : vector<16x32xf32>, vector<32x32xf32>, vector<16x32xf32> -> vector<16x32xf32>
    %18 = vector.broadcast %4 : vector<1x32xf32> to vector<16x32xf32>
    %19 = arith.addf %17, %18 : vector<16x32xf32>
    %20 = vector.shape_cast %15 : vector<16x64xf32> to vector<16x8x8xf32>
    %21 = tpu.transpose %20, [1, 0, 2] : vector<16x8x8xf32> -> vector<8x16x8xf32>
    %22 = vector.extract_strided_slice %21 {offsets = [0, 0, 0], sizes = [4, 16, 8], strides = [1, 1, 1]} : vector<8x16x8xf32> to vector<4x16x8xf32>
    %23 = vector.extract_strided_slice %21 {offsets = [4, 0, 0], sizes = [4, 16, 8], strides = [1, 1, 1]} : vector<8x16x8xf32> to vector<4x16x8xf32>
    %24 = vector.shape_cast %19 : vector<16x32xf32> to vector<16x4x8xf32>
    %25 = tpu.transpose %24, [1, 0, 2] : vector<16x4x8xf32> -> vector<4x16x8xf32>
    %26 = tpu.iota {dimensions = array<i32: 0>} : vector<16x16xi32>
    %c2_i32 = arith.constant 2 : i32
    %c0_i32 = arith.constant 0 : i32
    %27 = arith.cmpi eq, %c2_i32, %c0_i32 : i32
    %c1_i32 = arith.constant 1 : i32
    %28 = arith.select %27, %c1_i32, %c2_i32 : i32
    %29 = vector.broadcast %28 : i32 to vector<16x16xi32>
    %30 = arith.remsi %26, %29 : vector<16x16xi32>
    %c0_i32_12 = arith.constant 0 : i32
    %31 = vector.broadcast %c0_i32_12 : i32 to vector<16x16xi32>
    %32 = arith.cmpi ne, %30, %31 : vector<16x16xi32>
    %c0_i32_13 = arith.constant 0 : i32
    %33 = vector.broadcast %c0_i32_13 : i32 to vector<16x16xi32>
    %34 = arith.cmpi slt, %30, %33 : vector<16x16xi32>
    %c0_i32_14 = arith.constant 0 : i32
    %35 = arith.cmpi slt, %28, %c0_i32_14 : i32
    %36 = vector.broadcast %35 : i1 to vector<16x16xi1>
    %37 = vector.broadcast %36 : vector<16x16xi1> to vector<16x16xi1>
    %38 = arith.xori %34, %37 : vector<16x16xi1>
    %39 = arith.andi %38, %32 : vector<16x16xi1>
    %40 = vector.broadcast %28 : i32 to vector<16x16xi32>
    %41 = arith.addi %30, %40 : vector<16x16xi32>
    %42 = arith.select %39, %41, %30 : vector<16x16xi1>, vector<16x16xi32>
    %43 = tpu.iota {dimensions = array<i32: 1>} : vector<16x16xi32>
    %c2_i32_15 = arith.constant 2 : i32
    %c0_i32_16 = arith.constant 0 : i32
    %44 = arith.cmpi eq, %c2_i32_15, %c0_i32_16 : i32
    %c1_i32_17 = arith.constant 1 : i32
    %45 = arith.select %44, %c1_i32_17, %c2_i32_15 : i32
    %46 = vector.broadcast %45 : i32 to vector<16x16xi32>
    %47 = arith.remsi %43, %46 : vector<16x16xi32>
    %c0_i32_18 = arith.constant 0 : i32
    %48 = vector.broadcast %c0_i32_18 : i32 to vector<16x16xi32>
    %49 = arith.cmpi ne, %47, %48 : vector<16x16xi32>
    %c0_i32_19 = arith.constant 0 : i32
    %50 = vector.broadcast %c0_i32_19 : i32 to vector<16x16xi32>
    %51 = arith.cmpi slt, %47, %50 : vector<16x16xi32>
    %c0_i32_20 = arith.constant 0 : i32
    %52 = arith.cmpi slt, %45, %c0_i32_20 : i32
    %53 = vector.broadcast %52 : i1 to vector<16x16xi1>
    %54 = vector.broadcast %53 : vector<16x16xi1> to vector<16x16xi1>
    %55 = arith.xori %51, %54 : vector<16x16xi1>
    %56 = arith.andi %55, %49 : vector<16x16xi1>
    %57 = vector.broadcast %45 : i32 to vector<16x16xi32>
    %58 = arith.addi %47, %57 : vector<16x16xi32>
    %59 = arith.select %56, %58, %47 : vector<16x16xi1>, vector<16x16xi32>
    %60 = arith.cmpi eq, %42, %59 : vector<16x16xi32>
    %c0_21 = arith.constant 0 : index
    %c0_22 = arith.constant 0 : index
    %61 = vector.load %arg2[%c0_21, %c0_22] : memref<1x16xf32, #tpu.memory_space<vmem>>, vector<1x16xf32>
    %cst_23 = arith.constant 0.000000e+00 : f32
    %62 = vector.broadcast %cst_23 : f32 to vector<1x16xf32>
    %63 = arith.cmpf oeq, %61, %62 : vector<1x16xf32>
    %64 = vector.broadcast %63 : vector<1x16xi1> to vector<16x16xi1>
    %65 = arith.andi %60, %64 : vector<16x16xi1>
    %cst_24 = arith.constant 0.000000e+00 : f32
    %cst_25 = arith.constant -1.000000e+30 : f32
    %66 = vector.broadcast %cst_24 : f32 to vector<16x16xf32>
    %67 = vector.broadcast %cst_25 : f32 to vector<16x16xf32>
    %68 = arith.select %65, %66, %67 : vector<16x16xi1>, vector<16x16xf32>
    %cst_26 = arith.constant dense<0.000000e+00> : vector<4x16x16xf32>
    %69 = tpu.matmul %22, %23, %cst_26 {dimension_numbers = #tpu.dot_dimension_numbers<[2], [2], [1], [1], [0, 0, 0, 1, 1, 1], [0], [0]>} : vector<4x16x8xf32>, vector<4x16x8xf32>, vector<4x16x16xf32> -> vector<4x16x16xf32>
    %cst_27 = arith.constant 0.353553385 : f32
    %70 = vector.broadcast %cst_27 : f32 to vector<4x16x16xf32>
    %71 = arith.mulf %69, %70 : vector<4x16x16xf32>
    %72 = vector.shape_cast %68 : vector<16x16xf32> to vector<1x16x16xf32>
    %73 = vector.broadcast %72 : vector<1x16x16xf32> to vector<4x16x16xf32>
    %74 = arith.addf %71, %73 : vector<4x16x16xf32>
    %cst_28 = arith.constant dense<0xFF800000> : vector<4x16xf32>
    %75 = vector.multi_reduction <maximumf>, %74, %cst_28 [2] : vector<4x16x16xf32> to vector<4x16xf32>
    %76 = vector.shape_cast %75 : vector<4x16xf32> to vector<4x16x1xf32>
    %77 = vector.broadcast %76 : vector<4x16x1xf32> to vector<4x16x16xf32>
    %78 = arith.subf %74, %77 : vector<4x16x16xf32>
    %79 = math.exp %78 : vector<4x16x16xf32>
    %cst_29 = arith.constant dense<0.000000e+00> : vector<4x16xf32>
    %80 = vector.multi_reduction <add>, %79, %cst_29 [2] : vector<4x16x16xf32> to vector<4x16xf32>
    %81 = vector.shape_cast %80 : vector<4x16xf32> to vector<4x16x1xf32>
    %82 = tpu.reciprocal %81 : vector<4x16x1xf32> -> vector<4x16x1xf32>
    %83 = vector.broadcast %82 : vector<4x16x1xf32> to vector<4x16x16xf32>
    %84 = arith.mulf %79, %83 : vector<4x16x16xf32>
    %cst_30 = arith.constant dense<0.000000e+00> : vector<4x16x8xf32>
    %85 = tpu.matmul %84, %25, %cst_30 {dimension_numbers = #tpu.dot_dimension_numbers<[2], [1], [1], [2], [0, 0, 0, 1, 1, 2], [0], [0]>} : vector<4x16x16xf32>, vector<4x16x8xf32>, vector<4x16x8xf32> -> vector<4x16x8xf32>
    %86 = tpu.transpose %85, [1, 0, 2] : vector<4x16x8xf32> -> vector<16x4x8xf32>
    %87 = vector.shape_cast %86 : vector<16x4x8xf32> to vector<16x32xf32>
    %c0_31 = arith.constant 0 : index
    %c0_32 = arith.constant 0 : index
    %88 = vector.load %arg5[%c0_31, %c0_32] : memref<32x32xf32, #tpu.memory_space<vmem>>, vector<32x32xf32>
    %cst_33 = arith.constant dense<0.000000e+00> : vector<16x32xf32>
    %89 = tpu.matmul %87, %88, %cst_33 {dimension_numbers = #tpu.dot_dimension_numbers<[1], [0], [0], [1], [0, 0, 1, 1], [], []>} : vector<16x32xf32>, vector<32x32xf32>, vector<16x32xf32> -> vector<16x32xf32>
    %90 = vector.broadcast %5 : vector<1x32xf32> to vector<16x32xf32>
    %91 = arith.addf %89, %90 : vector<16x32xf32>
    %92 = arith.addf %0, %91 : vector<16x32xf32>
    %cst_34 = arith.constant dense<0.000000e+00> : vector<16xf32>
    %93 = vector.multi_reduction <add>, %92, %cst_34 [1] : vector<16x32xf32> to vector<16xf32>
    %94 = vector.shape_cast %93 : vector<16xf32> to vector<16x1xf32>
    %cst_35 = arith.constant 3.200000e+01 : f32
    %95 = vector.broadcast %cst_35 : f32 to vector<16x1xf32>
    %96 = arith.divf %94, %95 : vector<16x1xf32>
    %97 = arith.mulf %92, %92 : vector<16x32xf32>
    %cst_36 = arith.constant dense<0.000000e+00> : vector<16xf32>
    %98 = vector.multi_reduction <add>, %97, %cst_36 [1] : vector<16x32xf32> to vector<16xf32>
    %99 = vector.shape_cast %98 : vector<16xf32> to vector<16x1xf32>
    %cst_37 = arith.constant 3.200000e+01 : f32
    %100 = vector.broadcast %cst_37 : f32 to vector<16x1xf32>
    %101 = arith.divf %99, %100 : vector<16x1xf32>
    %102 = arith.mulf %96, %96 : vector<16x1xf32>
    %103 = arith.subf %101, %102 : vector<16x1xf32>
    %104 = vector.broadcast %96 : vector<16x1xf32> to vector<16x32xf32>
    %105 = arith.subf %92, %104 : vector<16x32xf32>
    %cst_38 = arith.constant 9.99999974E-6 : f32
    %106 = vector.broadcast %cst_38 : f32 to vector<16x1xf32>
    %107 = arith.addf %103, %106 : vector<16x1xf32>
    %108 = math.rsqrt %107 : vector<16x1xf32>
    %109 = vector.broadcast %108 : vector<16x1xf32> to vector<16x32xf32>
    %110 = arith.mulf %105, %109 : vector<16x32xf32>
    %111 = vector.broadcast %7 : vector<1x32xf32> to vector<16x32xf32>
    %112 = arith.mulf %110, %111 : vector<16x32xf32>
    %113 = vector.broadcast %8 : vector<1x32xf32> to vector<16x32xf32>
    %114 = arith.addf %112, %113 : vector<16x32xf32>
    %c0_39 = arith.constant 0 : index
    %c0_40 = arith.constant 0 : index
    %115 = vector.load %arg6[%c0_39, %c0_40] : memref<32x64xf32, #tpu.memory_space<vmem>>, vector<32x64xf32>
    %cst_41 = arith.constant dense<0.000000e+00> : vector<16x64xf32>
    %116 = tpu.matmul %114, %115, %cst_41 {dimension_numbers = #tpu.dot_dimension_numbers<[1], [0], [0], [1], [0, 0, 1, 1], [], []>} : vector<16x32xf32>, vector<32x64xf32>, vector<16x64xf32> -> vector<16x64xf32>
    %c0_42 = arith.constant 0 : index
    %c0_43 = arith.constant 0 : index
    %117 = vector.load %arg9[%c0_42, %c0_43] : memref<1x64xf32, #tpu.memory_space<vmem>>, vector<1x64xf32>
    %118 = vector.broadcast %117 : vector<1x64xf32> to vector<16x64xf32>
    %119 = arith.addf %116, %118 : vector<16x64xf32>
    %cst_44 = arith.constant 0.000000e+00 : f32
    %120 = vector.broadcast %cst_44 : f32 to vector<16x64xf32>
    %121 = arith.maximumf %119, %120 : vector<16x64xf32>
    %c0_45 = arith.constant 0 : index
    %c0_46 = arith.constant 0 : index
    %122 = vector.load %arg7[%c0_45, %c0_46] : memref<64x32xf32, #tpu.memory_space<vmem>>, vector<64x32xf32>
    %cst_47 = arith.constant dense<0.000000e+00> : vector<16x32xf32>
    %123 = tpu.matmul %121, %122, %cst_47 {dimension_numbers = #tpu.dot_dimension_numbers<[1], [0], [0], [1], [0, 0, 1, 1], [], []>} : vector<16x64xf32>, vector<64x32xf32>, vector<16x32xf32> -> vector<16x32xf32>
    %124 = vector.broadcast %6 : vector<1x32xf32> to vector<16x32xf32>
    %125 = arith.addf %123, %124 : vector<16x32xf32>
    %126 = arith.addf %114, %125 : vector<16x32xf32>
    %cst_48 = arith.constant dense<0.000000e+00> : vector<16xf32>
    %127 = vector.multi_reduction <add>, %126, %cst_48 [1] : vector<16x32xf32> to vector<16xf32>
    %128 = vector.shape_cast %127 : vector<16xf32> to vector<16x1xf32>
    %cst_49 = arith.constant 3.200000e+01 : f32
    %129 = vector.broadcast %cst_49 : f32 to vector<16x1xf32>
    %130 = arith.divf %128, %129 : vector<16x1xf32>
    %131 = arith.mulf %126, %126 : vector<16x32xf32>
    %cst_50 = arith.constant dense<0.000000e+00> : vector<16xf32>
    %132 = vector.multi_reduction <add>, %131, %cst_50 [1] : vector<16x32xf32> to vector<16xf32>
    %133 = vector.shape_cast %132 : vector<16xf32> to vector<16x1xf32>
    %cst_51 = arith.constant 3.200000e+01 : f32
    %134 = vector.broadcast %cst_51 : f32 to vector<16x1xf32>
    %135 = arith.divf %133, %134 : vector<16x1xf32>
    %136 = arith.mulf %130, %130 : vector<16x1xf32>
    %137 = arith.subf %135, %136 : vector<16x1xf32>
    %138 = vector.broadcast %130 : vector<16x1xf32> to vector<16x32xf32>
    %139 = arith.subf %126, %138 : vector<16x32xf32>
    %cst_52 = arith.constant 9.99999974E-6 : f32
    %140 = vector.broadcast %cst_52 : f32 to vector<16x1xf32>
    %141 = arith.addf %137, %140 : vector<16x1xf32>
    %142 = math.rsqrt %141 : vector<16x1xf32>
    %143 = vector.broadcast %142 : vector<16x1xf32> to vector<16x32xf32>
    %144 = arith.mulf %139, %143 : vector<16x32xf32>
    %145 = vector.broadcast %9 : vector<1x32xf32> to vector<16x32xf32>
    %146 = arith.mulf %144, %145 : vector<16x32xf32>
    %147 = vector.broadcast %10 : vector<1x32xf32> to vector<16x32xf32>
    %148 = arith.addf %146, %147 : vector<16x32xf32>
    %c0_53 = arith.constant 0 : index
    %c0_54 = arith.constant 0 : index
    %149 = vector.load %arg11[%c0_53, %c0_54] : memref<16x32xf32, #tpu.memory_space<vmem>>, vector<16x32xf32>
    tpu.vector_store %arg11[%c0_53, %c0_54], %148 {strides = array<i32>} : memref<16x32xf32, #tpu.memory_space<vmem>>, vector<16x32xf32>,
    return
  }
}

</mosaic_0001>

<bundles_post_ra>
// kernel: transformer_encoder_layer.1
= control target key start
LH: loop header
LB: loop body
LE: loop exit
PB: predicated region body
PF: predicated region fallthrough
CT: control target
= control target key end

     0   :  { %16 = vsyncpa [#allocation3], 0  ;;  %s3625_s0 = inlined_call_operand.hbm [shape: f32[16,32], index: 0, kind: input, shape index: {}]   ;;  %s3626_s1 = inlined_call_operand.hbm [shape: f32[16,32], index: 1, kind: input, shape index: {}]   ;;  %s3627_s2 = inlined_call_operand.vmem [shape: f32[1,16], index: 2, kind: input, shape index: {}]   ;;  %s3628_s3 = inlined_call_operand.vmem [shape: f32[32,64], index: 3, kind: input, shape index: {}]   ;;  %s3629_s4 = inlined_call_operand.vmem [shape: f32[32,32], index: 4, kind: input, shape index: {}]   ;;  %s3630_s5 = inlined_call_operand.vmem [shape: f32[32,32], index: 5, kind: input, shape index: {}]   ;;  %s3631_s6 = inlined_call_operand.hbm [shape: f32[32,64], index: 6, kind: input, shape index: {}]   ;;  %s3632_s7 = inlined_call_operand.vmem [shape: f32[64,32], index: 7, kind: input, shape index: {}]   ;;  %s3633_s8 = inlined_call_operand.vmem [shape: f32[1,64], index: 8, kind: input, shape index: {}]   ;;  %s3634_s9 = inlined_call_operand.vmem [shape: f32[1,64], index: 9, kind: input, shape index: {}]   ;;  %s3635_s10 = inlined_call_operand.hbm [shape: f32[8,32], index: 10, kind: input, shape index: {}]   ;;  %s3636_s11 = inlined_call_operand.hbm [shape: f32[16,32], index: 11, kind: output, shape index: {}]  }
   0x1   :  { %17 = vsyncpa [#allocation6], 0 }
   0x2   :  { %18 = vsyncpa [#allocation9], 0 }
   0x3   :  { %19 = vsyncpa [#allocation4], 0  ;;  %s3100_s17 = smov [#allocation5]   ;;  %s3101_s19 = smov [#allocation2]  }
   0x4   :  { %s37_s18 = sshll.u32 %s3100_s17, 4  ;;  %s25_s20 = sshll.u32 %s3101_s19, 4  ;;  %s38_s18 = int_to_ptr.vmem [resolvable:$true] %s37_s18  ;;  %s26_s20 = int_to_ptr.vmem [resolvable:$true] %s25_s20 }
   0x5   :  { %s3000_s21 = scalar_lea.vmem %s38_s18, 256  ;;  %p3005_p1 = scmp.lt.s32.totalorder %s38_s18, %s38_s18 }
   0x6   :  { %p3001_p0 = scmp.ne.s32.totalorder %s38_s18, %s3000_s21  ;;  %p3006_p2 = scmp.lt.s32.totalorder %s3000_s21, %s3000_s21 }
   0x8   :  { %p3007_p3 = por %p3006_p2, %p3005_p1 }
   0xa   :  { %p3008_p4 = pnand %p3007_p3, %p3001_p0 }
   0xc   :  { %3011 = shalt.err (!%p3008_p4)
}
   0xd   :  { %s3102_s22 = smov 128   ;;  %s3103_s23 = smov 8  }
   0xe   :  { %43 = dma.hbm_to_vmem [thread:$0]  %s3626_s1, 256, %s38_s18, [#allocation6], %s3102_s22, %s3102_s22, %s3103_s23  }
   0xf   :  { %s3020_s26 = scalar_lea.vmem %s26_s20, 256  ;;  %p3025_p6 = scmp.lt.s32.totalorder %s26_s20, %s26_s20 }
  0x10   :  { %p3021_p5 = scmp.ne.s32.totalorder %s26_s20, %s3020_s26  ;;  %p3026_p7 = scmp.lt.s32.totalorder %s3020_s26, %s3020_s26 }
  0x12   :  { %p3027_p8 = por %p3026_p7, %p3025_p6 }
  0x14   :  { %p3028_p9 = pnand %p3027_p8, %p3021_p5 }
  0x16   :  { %3031 = shalt.err (!%p3028_p9)
}
  0x17   :  { %31 = dma.hbm_to_vmem [thread:$0]  %s3625_s0, 256, %s26_s20, [#allocation3], %s3102_s22, %s3102_s22, %s3103_s23  }
  0x18   :  { %s3104_s29 = smov [#allocation7]   ;;  %s3105_s12 = smov [#allocation8]  }
  0x19   :  { %s57_s30 = sshll.u32 %s3104_s29, 4  ;;  %s76_s13 = sshll.u32 %s3105_s12, 4  ;;  %s58_s30 = int_to_ptr.vmem [resolvable:$true] %s57_s30  ;;  %s77_s13 = int_to_ptr.vmem [resolvable:$true] %s76_s13 }
  0x1a   :  { %s3040_s1 = scalar_lea.vmem %s58_s30, 512  ;;  %p3045_p11 = scmp.lt.s32.totalorder %s58_s30, %s58_s30 }
  0x1b   :  { %p3041_p10 = scmp.ne.s32.totalorder %s58_s30, %s3040_s1  ;;  %p3046_p12 = scmp.lt.s32.totalorder %s3040_s1, %s3040_s1 }
  0x1d   :  { %p3047_p13 = por %p3046_p12, %p3045_p11 }
  0x1f   :  { %p3048_p0 = pnand %p3047_p13, %p3041_p10 }
  0x21   :  { %3051 = shalt.err (!%p3048_p0)
}
  0x22   :  { %63 = dma.hbm_to_vmem [thread:$0]  %s3631_s6, 512, %s58_s30, [#allocation6], %s3102_s22, %s3102_s22, %s3103_s23  }
  0x23   :  { %s3060_s0 = scalar_lea.vmem %s77_s13, 128  ;;  %p3065_p2 = scmp.lt.s32.totalorder %s77_s13, %s77_s13 }
  0x24   :  { %p3061_p1 = scmp.ne.s32.totalorder %s77_s13, %s3060_s0  ;;  %p3066_p3 = scmp.lt.s32.totalorder %s3060_s0, %s3060_s0 }
  0x26   :  { %p3067_p4 = por %p3066_p3, %p3065_p2 }
  0x28   :  { %p3068_p5 = pnand %p3067_p4, %p3061_p1 }
  0x2a   :  { %3071 = shalt.err (!%p3068_p5)
}
  0x2b   :  { %79 = dma.hbm_to_vmem [thread:$0]  %s3635_s10, 128, %s77_s13, [#allocation9]  }
  0x2c   :  { %3092 = dma.done.wait [#allocation3], 256  }
  0x2d   :  { %3093 = vsyncadd [#allocation3], 4294967040 }
  0x2e   :  { %3094 = dma.done.wait [#allocation6], 768  }
  0x2f   :  { %3095 = vsyncadd [#allocation6], 4294966528 }
  0x30   :  { %3096 = dma.done.wait [#allocation9], 128  }
  0x31   :  { %3097 = vsyncadd [#allocation9], 4294967168  ;;  %v102_v0 = vld [vmem:[%s3628_s3 + $0x18] sm:$0xff]  ;;  %v101_v1 = vld [vmem:[%s3628_s3 + $0x10] sm:$0xff]  ;;  %vm110_vm0 = vcmask 261120   ;;  %s3106_s15 = smov 80   ;;  %v196_v19 = vlaneseq }
  0x32   :  { %2810 = vmatprep.subr.mxu1 %v102_v0  ;;  %v92_v2 = vld [vmem:[#allocation2] sm:$0xff]  ;;  %v94_v3 = vld [vmem:[#allocation5] sm:$0xff]  ;;  %v100_v4 = vld [vmem:[%s3628_s3 + $0x8] sm:$0xff]  ;;  %s3107_s0 = smov 96   ;;  %s3109_s16 = smov 88   ;;  %vm1216_vm1 = vcmask 64512  }
  0x33   :  { %2811 = vmatpush3.msra.mxu1 %v102_v0  ;;  %v96_v5 = vadd.f32 %v94_v3, %v92_v2  ;;  %v93_v6 = vld [vmem:[#allocation2 + $0x8] sm:$0xff]  ;;  %v95_v7 = vld [vmem:[#allocation5 + $0x8] sm:$0xff]  ;;  %v99_v8 = vld [vmem:[%s3628_s3] sm:$0xff]  ;;  %s3111_s17 = smov 112   ;;  %s3112_s18 = smov 104   ;;  %v3257_v24 = vshrl.u32 %v196_v19, 7 }
  0x34   :  { %2812 = vmatprep.subr.mxu1 %v101_v1  ;;  %v97_v9 = vadd.f32 %v95_v7, %v93_v6  ;;  %v195_v10 = vld [vmem:[%s3629_s4 + $0x18] sm:$0xff]  ;;  %v194_v11 = vld [vmem:[%s3629_s4 + $0x10] sm:$0xff]  ;;  %v193_v12 = vld [vmem:[%s3629_s4 + $0x8] sm:$0xff]  ;;  %v3113_v20 = vmov 1983009808   ;;  %vm1581_vm8 = vcmask 130048  }
  0x35   :  { %2813 = vmatpush3.msra.mxu1 %v101_v1  ;;  %2818 = vmatprep.mubr.msk.f32.mxu1 %vm110_vm0, %v96_v5  ;;  %v2684_v13 = vld [vmem:[%s3633_s8] ss:$0 sm:$0xff]  ;;  %s3108_s8 = smov 72   ;;  %v328_v21 = vunpack.c.l.s4 %v3113_v20  ;;  %v3114_v22 = vmov 1934713408   ;;  %s3117_s28 = smov 16  }
  0x36   :  { %2814 = vmatprep.subr.mxu1 %v100_v4  ;;  %v192_v14 = vld [vmem:[%s3629_s4] sm:$0xff]  ;;  %s3110_s4 = smov 120   ;;  %v392_v23 = vunpack.c.l.s4 %v3114_v22  ;;  %vm2294_vm9 = vcmask 195584   ;;  %vm2537_vm10 = vcmask 523264  }
  0x37   :  { %2815 = vmatpush3.msra.mxu1 %v100_v4  ;;  %v329_v25 = vunpack.c.0.s8 %v328_v21 }
  0x38   :  { %2816 = vmatprep.subr.mxu1 %v99_v8  ;;  %v393_v28 = vunpack.c.0.s8 %v392_v23 }
  0x39   :  { %2817 = vmatpush3.msra.mxu1 %v99_v8  ;;  %v3260_v29 = vsub.s32 %v329_v25, %v3257_v24 }
  0x3a   :  { %2819 = vmatmul.mubr.msk.f32.vlgmr.msra.gmra.mxu1 %vm110_vm0, %v97_v9  ;;  %2821 = vmatprep.subr.mxu1 %v195_v10  ;;  %v3263_v36 = vsub.s32 %v393_v28, %v3257_v24 }
  0x3b   :  { %2829 = vmatprep.mubr.msk.f32.mxu1 %vm110_vm0, %v92_v2  ;;  %2822 = vmatpush3.msra.mxu1 %v195_v10 }
  0x3c   :  { %2823 = vmatprep.subr.mxu1 %v194_v11 }
  0x3d   :  { %2824 = vmatpush3.msra.mxu1 %v194_v11 }
  0x3e   :  { %2825 = vmatprep.subr.mxu1 %v193_v12 }
  0x3f   :  { %2826 = vmatpush3.msra.mxu1 %v193_v12 }
  0x40   :  { %2827 = vmatprep.subr.mxu1 %v192_v14 }
  0x41   :  { %2828 = vmatpush3.msra.mxu1 %v192_v14 }
  0x42   :  { %2830 = vmatmul.mubr.msk.f32.vlgmr.msra.gmra.mxu1 %vm110_vm0, %v93_v6 }
  0xfa   :  { %v2820_v15 = vpop.f32.mrf.mxu1 }
  0xfb   :  { %v3231_v16 = vadd.f32 %v2820_v15, %v2684_v13 }
  0xfc   :  { %v183_v17 = vpop.f32.mrf.mxu1 }
  0xfd   :  { %315 = vrot.lane.b32.xlu1 %v3231_v16, %s3106_s15  ;;  %303 = vrot.lane.b32.xlu0 %v3231_v16, %s3107_s0  ;;  %v3238_v18 = vadd.f32 %v2684_v13, %v183_v17 }
 0x101   :  { %321 = vrot.lane.b32.xlu1 %v3231_v16, %s3108_s8  ;;  %309 = vrot.lane.b32.xlu0 %v3231_v16, %s3109_s16 }
 0x105   :  { %285 = vrot.lane.b32.xlu1 %v3231_v16, %s3110_s4  ;;  %301 = vrot.lane.b32.xlu0 %v3238_v18, %s3107_s0 }
 0x109   :  { %307 = vrot.lane.b32.xlu1 %v3238_v18, %s3109_s16  ;;  %313 = vrot.lane.b32.xlu0 %v3238_v18, %s3106_s15 }
 0x10d   :  { %319 = vrot.lane.b32.xlu1 %v3238_v18, %s3108_s8  ;;  %283 = vrot.lane.b32.xlu0 %v3238_v18, %s3110_s4 }
 0x111   :  { %289 = vrot.lane.b32.xlu1 %v3238_v18, %s3111_s17  ;;  %295 = vrot.lane.b32.xlu0 %v3238_v18, %s3112_s18 }
 0x115   :  { %297 = vrot.lane.b32.xlu1 %v3231_v16, %s3112_s18  ;;  %291 = vrot.lane.b32.xlu0 %v3231_v16, %s3111_s17 }
 0x16f   :  { %v316_v26 = vpop.permute.xlu1 %315  ;;  %v304_v27 = vpop.permute.xlu0 %303 }
 0x170   :  { %v493_v30 = vcombine.low %v304_v27, %v316_v26  ;;  %v494_v31 = vcombine.high %v304_v27, %v316_v26 }
 0x172   :  { %v501_v37 = vrot.slane %v493_v30, %v3260_v29  ;;  %v508_v38 = vrot.slane %v494_v31, %v3260_v29 }
 0x173   :  { %v322_v32 = vpop.permute.xlu1 %321  ;;  %v310_v33 = vpop.permute.xlu0 %309 }
 0x174   :  { %v509_v34 = vcombine.low %v310_v33, %v322_v32  ;;  %v510_v35 = vcombine.high %v310_v33, %v322_v32 }
 0x176   :  { %v517_v39 = vrot.slane %v509_v34, %v3260_v29  ;;  %v524_v40 = vrot.slane %v510_v35, %v3260_v29 }
 0x177   :  { %v3269_v41 = vpop.permute.xlu1 %285  ;;  %v302_v42 = vpop.permute.xlu0 %301 }
 0x178   :  { %v557_v43 = vcombine.low %v501_v37, %v517_v39  ;;  %v558_v44 = vcombine.high %v501_v37, %v517_v39  ;;  %v573_v45 = vcombine.low %v508_v38, %v524_v40  ;;  %v574_v46 = vcombine.high %v508_v38, %v524_v40 }
 0x17a   :  { %v565_v47 = vrot.slane %v557_v43, %v3263_v36  ;;  %v572_v48 = vrot.slane %v558_v44, %v3263_v36  ;;  %v581_v49 = vrot.slane %v573_v45, %v3263_v36  ;;  %v588_v50 = vrot.slane %v574_v46, %v3263_v36 }
 0x17b   :  { %v308_v51 = vpop.permute.xlu1 %307  ;;  %v314_v52 = vpop.permute.xlu0 %313 }
 0x17c   :  { %v2698_v53 = vcombine.low %v565_v47, %v572_v48  ;;  %v2700_v54 = vcombine.high %v565_v47, %v572_v48  ;;  %v2702_v55 = vcombine.low %v581_v49, %v588_v50  ;;  %v2704_v56 = vcombine.high %v581_v49, %v588_v50 }
 0x17d   :  { %v357_v57 = vcombine.low %v302_v42, %v314_v52  ;;  %v358_v58 = vcombine.high %v302_v42, %v314_v52 }
 0x17e   :  { %v748_v59 = vrot.slane %v2698_v53, %v3260_v29  ;;  %v764_v60 = vrot.slane %v2700_v54, %v3260_v29  ;;  %v780_v63 = vrot.slane %v2702_v55, %v3260_v29  ;;  %v796_v0 = vrot.slane %v2704_v56, %v3260_v29 }
 0x17f   :  { %v320_v61 = vpop.permute.xlu1 %319  ;;  %v284_v62 = vpop.permute.xlu0 %283  ;;  %v365_v7 = vrot.slane %v357_v57, %v3260_v29  ;;  %v372_v8 = vrot.slane %v358_v58, %v3260_v29 }
 0x180   :  { %v373_v1 = vcombine.low %v308_v51, %v320_v61  ;;  %v374_v2 = vcombine.high %v308_v51, %v320_v61  ;;  %v813_v3 = vcombine.low %v748_v59, %v764_v60  ;;  %v814_v4 = vcombine.high %v748_v59, %v764_v60 }
 0x181   :  { %v845_v5 = vcombine.low %v780_v63, %v796_v0  ;;  %v846_v6 = vcombine.high %v780_v63, %v796_v0 }
 0x182   :  { %v381_v9 = vrot.slane %v373_v1, %v3260_v29  ;;  %v388_v10 = vrot.slane %v374_v2, %v3260_v29  ;;  %v821_v13 = vrot.slane %v813_v3, %v3263_v36  ;;  %v828_v15 = vrot.slane %v814_v4, %v3263_v36 }
 0x183   :  { %v290_v11 = vpop.permute.xlu1 %289  ;;  %v296_v12 = vpop.permute.xlu0 %295  ;;  %v853_v14 = vrot.slane %v845_v5, %v3263_v36  ;;  %v860_v17 = vrot.slane %v846_v6, %v3263_v36 }
 0x184   :  { %v421_v20 = vcombine.low %v365_v7, %v381_v9  ;;  %v422_v21 = vcombine.high %v365_v7, %v381_v9  ;;  %v437_v22 = vcombine.low %v372_v8, %v388_v10  ;;  %v438_v23 = vcombine.high %v372_v8, %v388_v10 }
 0x185   :  { %v325_v25 = vcombine.low %v3238_v18, %v290_v11  ;;  %v326_v26 = vcombine.high %v3238_v18, %v290_v11  ;;  %v341_v27 = vcombine.low %v284_v62, %v296_v12  ;;  %v342_v28 = vcombine.high %v284_v62, %v296_v12 }
 0x186   :  { %v429_v30 = vrot.slane %v421_v20, %v3263_v36  ;;  %v436_v31 = vrot.slane %v422_v21, %v3263_v36  ;;  %v445_v32 = vrot.slane %v437_v22, %v3263_v36  ;;  %v452_v33 = vrot.slane %v438_v23, %v3263_v36 }
 0x187   :  { %v333_v34 = vrot.slane %v325_v25, %v3260_v29  ;;  %v340_v35 = vrot.slane %v326_v26, %v3260_v29  ;;  %v349_v37 = vrot.slane %v341_v27, %v3260_v29  ;;  %v356_v38 = vrot.slane %v342_v28, %v3260_v29  ;;  %v298_v47 = vpop.permute.xlu1 %297  ;;  %v292_v52 = vpop.permute.xlu0 %291 }
 0x188   :  { %v2690_v39 = vcombine.low %v429_v30, %v436_v31  ;;  %v2692_v18 = vcombine.high %v429_v30, %v436_v31  ;;  %v2694_v40 = vcombine.low %v445_v32, %v452_v33  ;;  %v2696_v42 = vcombine.high %v445_v32, %v452_v33 }
 0x189   :  { %v389_v43 = vcombine.low %v333_v34, %v349_v37  ;;  %v390_v44 = vcombine.high %v333_v34, %v349_v37  ;;  %v405_v45 = vcombine.low %v340_v35, %v356_v38  ;;  %v406_v46 = vcombine.high %v340_v35, %v356_v38 }
 0x18a   :  { %v3298_v48 = vrot.slane %v2690_v39, %v3260_v29  ;;  %v3301_v49 = vrot.slane %v2692_v18, %v3260_v29  ;;  %v3304_v50 = vrot.slane %v2694_v40, %v3260_v29  ;;  %v3307_v51 = vrot.slane %v2696_v42, %v3260_v29 }
 0x18b   :  { %v397_v53 = vrot.slane %v389_v43, %v3263_v36  ;;  %v404_v54 = vrot.slane %v390_v44, %v3263_v36  ;;  %v413_v55 = vrot.slane %v405_v45, %v3263_v36  ;;  %v420_v56 = vrot.slane %v406_v46, %v3263_v36 }
 0x18c   :  { %v865_v57 = vcombine.low %v821_v13, %v853_v14  ;;  %v866_v58 = vcombine.high %v821_v13, %v853_v14  ;;  %v477_v59 = vcombine.low %v3269_v41, %v298_v47  ;;  %v478_v60 = vcombine.high %v3269_v41, %v298_v47 }
 0x18d   :  { %v461_v61 = vcombine.low %v3231_v16, %v292_v52  ;;  %v462_v62 = vcombine.high %v3231_v16, %v292_v52  ;;  %v677_v63 = vcombine.low %v3298_v48, %v3301_v49  ;;  %v709_v0 = vcombine.low %v3304_v50, %v3307_v51 }
 0x18e   :  { %2832 = vmatprep.subr.msk.mxu0 %vm1216_vm1, %v865_v57  ;;  %2839 = vmatprep.subr.msk.mxu1 %vm1216_vm1, %v866_v58  ;;  %v485_v1 = vrot.slane %v477_v59, %v3260_v29  ;;  %v492_v2 = vrot.slane %v478_v60, %v3260_v29  ;;  %v3325_v3 = vcombine.low %v828_v15, %v860_v17 }
 0x18f   :  { %2833 = vmatpush3.xpose.msk.msra.mxu0 %vm1216_vm1, %v865_v57  ;;  %2840 = vmatpush3.xpose.msk.msra.mxu1 %vm1216_vm1, %v866_v58  ;;  %v469_v16 = vrot.slane %v461_v61, %v3260_v29  ;;  %v476_v41 = vrot.slane %v462_v62, %v3260_v29  ;;  %v685_v4 = vrot.slane %v677_v63, %v3263_v36 }
 0x190   :  { %v717_v5 = vrot.slane %v709_v0, %v3263_v36  ;;  %v868_v6 = vcombine.high %v828_v15, %v860_v17  ;;  %v2689_v7 = vcombine.low %v397_v53, %v404_v54  ;;  %v2691_v8 = vcombine.high %v397_v53, %v404_v54 }
 0x191   :  { %v525_v9 = vcombine.low %v469_v16, %v485_v1  ;;  %v526_v10 = vcombine.high %v469_v16, %v485_v1  ;;  %v541_v11 = vcombine.low %v476_v41, %v492_v2  ;;  %v542_v12 = vcombine.high %v476_v41, %v492_v2 }
 0x192   :  { %v729_v13 = vcombine.low %v685_v4, %v717_v5  ;;  %v730_v14 = vcombine.high %v685_v4, %v717_v5  ;;  %v605_v20 = vrot.slane %v2689_v7, %v3260_v29  ;;  %v621_v21 = vrot.slane %v2691_v8, %v3260_v29  ;;  %v3382_v4 = vld [vmem:[#allocation8] sm:$0xff] }
 0x193   :  { %v533_v22 = vrot.slane %v525_v9, %v3263_v36  ;;  %v540_v23 = vrot.slane %v526_v10, %v3263_v36  ;;  %v549_v25 = vrot.slane %v541_v11, %v3263_v36  ;;  %v556_v15 = vrot.slane %v542_v12, %v3263_v36  ;;  %v1204_v8 = vld [vmem:[%s3627_s2] sm:$0x1] }
 0x194   :  { %2834 = vmatprep.subr.msk.mxu0 %vm1216_vm1, %v729_v13  ;;  %2841 = vmatprep.subr.msk.mxu1 %vm1216_vm1, %v730_v14  ;;  %v2693_v17 = vcombine.low %v413_v55, %v420_v56  ;;  %v2695_v26 = vcombine.high %v413_v55, %v420_v56  ;;  %v661_v27 = vcombine.low %v605_v20, %v621_v21  ;;  %v198_v41 = vsub.s32 0, %v3257_v24 }
 0x195   :  { %v2697_v28 = vcombine.low %v533_v22, %v540_v23  ;;  %v2699_v30 = vcombine.high %v533_v22, %v540_v23  ;;  %v2701_v31 = vcombine.low %v549_v25, %v556_v15  ;;  %v2703_v32 = vcombine.high %v549_v25, %v556_v15  ;;  %2835 = vmatpush3.xpose.msk.msra.mxu0 %vm1216_vm1, %v729_v13 }
 0x196   :  { %2842 = vmatpush3.xpose.msk.msra.mxu1 %vm1216_vm1, %v730_v14  ;;  %2846 = vmatprep.subr.msk.mxu0 %vm1216_vm1, %v3325_v3  ;;  %v637_v33 = vrot.slane %v2693_v17, %v3260_v29  ;;  %v653_v34 = vrot.slane %v2695_v26, %v3260_v29  ;;  %v662_v35 = vcombine.high %v605_v20, %v621_v21  ;;  %vm1205_vm2 = vcmp.eq.f32.partialorder %v1204_v8, 0.0 }
 0x197   :  { %v741_v37 = vrot.slane %v2697_v28, %v3260_v29  ;;  %v757_v38 = vrot.slane %v2699_v30, %v3260_v29  ;;  %v773_v39 = vrot.slane %v2701_v31, %v3260_v29  ;;  %v789_v18 = vrot.slane %v2703_v32, %v3260_v29  ;;  %2853 = vmatprep.subr.msk.mxu1 %vm1216_vm1, %v868_v6 }
 0x198   :  { %v669_v40 = vrot.slane %v661_v27, %v3263_v36  ;;  %v693_v42 = vcombine.low %v637_v33, %v653_v34  ;;  %v694_v43 = vcombine.high %v637_v33, %v653_v34  ;;  %v678_v44 = vcombine.high %v3298_v48, %v3301_v49 }
 0x199   :  { %v797_v45 = vcombine.low %v741_v37, %v757_v38  ;;  %v829_v46 = vcombine.low %v773_v39, %v789_v18  ;;  %v710_v53 = vcombine.high %v3304_v50, %v3307_v51  ;;  %v676_v56 = vrot.slane %v662_v35, %v3263_v36 }
 0x19a   :  { %v701_v47 = vrot.slane %v693_v42, %v3263_v36  ;;  %v692_v52 = vrot.slane %v678_v44, %v3263_v36  ;;  %v708_v57 = vrot.slane %v694_v43, %v3263_v36  ;;  %v798_v49 = vcombine.high %v741_v37, %v757_v38 }
 0x19b   :  { %v805_v54 = vrot.slane %v797_v45, %v3263_v36  ;;  %v837_v55 = vrot.slane %v829_v46, %v3263_v36  ;;  %v724_v48 = vrot.slane %v710_v53, %v3263_v36  ;;  %v830_v60 = vcombine.high %v773_v39, %v789_v18 }
 0x19c   :  { %v725_v58 = vcombine.low %v669_v40, %v701_v47  ;;  %v726_v59 = vcombine.high %v669_v40, %v701_v47  ;;  %v727_v51 = vcombine.low %v676_v56, %v708_v57  ;;  %v728_v0 = vcombine.high %v676_v56, %v708_v57 }
 0x19d   :  { %v861_v61 = vcombine.low %v805_v54, %v837_v55  ;;  %v862_v62 = vcombine.high %v805_v54, %v837_v55  ;;  %v731_v50 = vcombine.low %v692_v52, %v724_v48  ;;  %v732_v63 = vcombine.high %v692_v52, %v724_v48 }
 0x19e   :  { %2836 = vmatprep.mubr.msk.f32.mxu0 %vm1216_vm1, %v725_v58  ;;  %2843 = vmatprep.mubr.msk.f32.mxu1 %vm1216_vm1, %v726_v59  ;;  %v812_v1 = vrot.slane %v798_v49, %v3263_v36  ;;  %v844_v2 = vrot.slane %v830_v60, %v3263_v36  ;;  %v3385_v5 = vrot.slane %v3382_v4, %v198_v41  ;;  %v1163_v9 = vadd.s32 8, %v3257_v24 }
 0x19f   :  { %2837 = vmatmul.mubr.msk.f32.vlgmr.msra.gmra.mxu0 %vm1216_vm1, %v861_v61  ;;  %2844 = vmatmul.mubr.msk.f32.vlgmr.msra.gmra.mxu1 %vm1216_vm1, %v862_v62  ;;  %v1189_v10 = vand.u32 127, %v196_v19  ;;  %v3115_v11 = vmov 0   ;;  %v1168_v21 = vand.u32 1, %v3257_v24  ;;  %v3116_v15 = vmov -1e+30  }
 0x1a0   :  { %2847 = vmatpush3.xpose.msk.msra.mxu0 %vm1216_vm1, %v3325_v3  ;;  %2854 = vmatpush3.xpose.msk.msra.mxu1 %vm1216_vm1, %v868_v6  ;;  %v863_v3 = vcombine.low %v812_v1, %v844_v2  ;;  %v864_v16 = vcombine.high %v812_v1, %v844_v2  ;;  %v2831_v6 = vpop.f32.mrf.mxu1  ;;  %v1206_v12 = vsel %vm1205_vm2, 1, %v3115_v11  ;;  %v1175_v14 = vand.u32 1, %v1163_v9 }
 0x1a1   :  { %2848 = vmatprep.subr.msk.mxu0 %vm1216_vm1, %v731_v50  ;;  %2850 = vmatprep.mubr.msk.f32.mxu0 %vm1216_vm1, %v727_v51  ;;  %v3388_v7 = vadd.f32 %v2831_v6, %v3385_v5  ;;  %v1210_v13 = vrot.slane %v1206_v12, %v198_v41  ;;  %v1194_v20 = vand.u32 1, %v1189_v10 }
 0x1a2   :  { %2855 = vmatprep.subr.msk.mxu1 %vm1216_vm1, %v732_v63  ;;  %2857 = vmatprep.mubr.msk.f32.mxu1 %vm1216_vm1, %v728_v0  ;;  %v272_v22 = vpop.f32.mrf.mxu1 }
 0x1a3   :  { %873 = vrot.lane.b32.xlu1 %v3388_v7, %s3110_s4  ;;  %vm1211_vm3 = vcmp.eq.s32.totalorder %v1210_v13, 1  ;;  %vm1203_vm4 = vcmp.eq.s32.totalorder %v1175_v14, %v1194_v20  ;;  %vm1202_vm5 = vcmp.eq.s32.totalorder %v1168_v21, %v1194_v20  ;;  %v3409_v60 = vadd.f32 %v272_v22, %v3385_v5 }
 0x1a4   :  { %2849 = vmatpush3.xpose.msk.msra.mxu0 %vm1216_vm1, %v731_v50  ;;  %2856 = vmatpush3.xpose.msk.msra.mxu1 %vm1216_vm1, %v732_v63  ;;  %vm1213_vm6 = vmand %vm1203_vm4, %vm1211_vm3 }
 0x1a5   :  { %vm1212_vm7 = vmand %vm1202_vm5, %vm1211_vm3  ;;  %v1215_v17 = vsel %vm1213_vm6, 0.0, %v3116_v15 }
 0x1a6   :  { %v1214_v30 = vsel %vm1212_vm7, 0.0, %v3116_v15 }
 0x1a7   :  { %2851 = vmatmul.mubr.msk.f32.vlgmr.msra.gmra.mxu0 %vm1216_vm1, %v863_v3  ;;  %2858 = vmatmul.mubr.msk.f32.vlgmr.msra.gmra.mxu1 %vm1216_vm1, %v864_v16 }
 0x215   :  { %v874_v61 = vpop.permute.xlu1 %873 }
 0x25f   :  { %v2838_v23 = vpop.f32.mrf.mxu0  ;;  %v2845_v25 = vpop.f32.mrf.mxu1 }
 0x260   :  { %v1566_v26 = vmul.f32 0.35355338, %v2838_v23  ;;  %v1568_v27 = vmul.f32 0.35355338, %v2845_v25 }
 0x261   :  { %v1295_v19 = vpop.f32.mrf.mxu0  ;;  %v1382_v28 = vpop.f32.mrf.mxu1 }
 0x262   :  { %v1567_v31 = vmul.f32 0.35355338, %v1382_v28  ;;  %v1574_v32 = vadd.f32 %v1566_v26, %v1215_v17  ;;  %v1565_v33 = vmul.f32 0.35355338, %v1295_v19  ;;  %v1576_v37 = vadd.f32 %v1568_v27, %v1215_v17 }
 0x264   :  { %v1585_v34 = vsel %vm1581_vm8, %v1574_v32, -inf  ;;  %v1575_v35 = vadd.f32 %v1567_v31, %v1214_v30  ;;  %v1573_v40 = vadd.f32 %v1565_v33, %v1214_v30  ;;  %v1591_v44 = vsel %vm1581_vm8, %v1576_v37, -inf }
 0x265   :  { %1586 = vmax.xlane.f32.xlu0 %v1585_v34 }
 0x266   :  { %v1588_v38 = vsel %vm1581_vm8, %v1575_v35, -inf  ;;  %v1582_v53 = vsel %vm1581_vm8, %v1573_v40, -inf }
 0x267   :  { %v2852_v39 = vpop.f32.mrf.mxu0  ;;  %v2859_v18 = vpop.f32.mrf.mxu1  ;;  %1589 = vmax.xlane.f32.xlu1 %v1588_v38 }
 0x268   :  { %v1570_v42 = vmul.f32 0.35355338, %v2852_v39  ;;  %v1572_v43 = vmul.f32 0.35355338, %v2859_v18 }
 0x269   :  { %v1469_v45 = vpop.f32.mrf.mxu0  ;;  %v1556_v46 = vpop.f32.mrf.mxu1  ;;  %1592 = vmax.xlane.f32.xlu0 %v1591_v44 }
 0x26a   :  { %v1569_v47 = vmul.f32 0.35355338, %v1469_v45  ;;  %v1578_v52 = vadd.f32 %v1570_v42, %v1215_v17  ;;  %v1571_v54 = vmul.f32 0.35355338, %v1556_v46  ;;  %v1580_v57 = vadd.f32 %v1572_v43, %v1215_v17 }
 0x26c   :  { %v1597_v55 = vsel %vm1581_vm8, %v1578_v52, -inf  ;;  %v1577_v56 = vadd.f32 %v1569_v47, %v1214_v30  ;;  %v1603_v59 = vsel %vm1581_vm8, %v1580_v57, -inf  ;;  %v1579_v48 = vadd.f32 %v1571_v54, %v1214_v30 }
 0x26d   :  { %1598 = vmax.xlane.f32.xlu1 %v1597_v55  ;;  %1583 = vmax.xlane.f32.xlu0 %v1582_v53 }
 0x26e   :  { %v1594_v58 = vsel %vm1581_vm8, %v1577_v56, -inf  ;;  %v1600_v49 = vsel %vm1581_vm8, %v1579_v48, -inf }
 0x271   :  { %1595 = vmax.xlane.f32.xlu1 %v1594_v58  ;;  %1604 = vmax.xlane.f32.xlu0 %v1603_v59 }
 0x275   :  { %1601 = vmax.xlane.f32.xlu0 %v1600_v49 }
 0x282   :  { %885 = vrot.lane.b32.xlu1 %v3388_v7, %s3112_s18 }
 0x286   :  { %871 = vrot.lane.b32.xlu1 %v3409_v60, %s3110_s4 }
 0x28b   :  { %879 = vrot.lane.b32.xlu0 %v3388_v7, %s3111_s17 }
 0x2ee   :  { %v1587_v62 = vpop.xlane.xlu0 %1586 }
 0x2ef   :  { %v1607_v50 = vsub.f32 %v1574_v32, %v1587_v62 }
 0x2f0   :  { %v1590_v51 = vpop.xlane.xlu1 %1589 }
 0x2f1   :  { %v1616_v63 = vmul.f32 1.442695, %v1607_v50  ;;  %v1608_v0 = vsub.f32 %v1575_v35, %v1590_v51 }
 0x2f2   :  { %v1593_v1 = vpop.xlane.xlu0 %1592 }
 0x2f3   :  { %2949 = vpow2.f32 %v1616_v63  ;;  %v1609_v2 = vsub.f32 %v1576_v37, %v1593_v1  ;;  %v1618_v3 = vmul.f32 1.442695, %v1608_v0 }
 0x2f5   :  { %v1620_v16 = vmul.f32 1.442695, %v1609_v2 }
 0x2f6   :  { %v1599_v41 = vpop.xlane.xlu1 %1598  ;;  %v1584_v5 = vpop.xlane.xlu0 %1583 }
 0x2f7   :  { %2951 = vpow2.f32 %v1620_v16  ;;  %v1611_v6 = vsub.f32 %v1578_v52, %v1599_v41  ;;  %v1606_v8 = vsub.f32 %v1573_v40, %v1584_v5 }
 0x2f8   :  { %2953 = vpow2.f32 %v1618_v3 }
 0x2f9   :  { %v1614_v9 = vmul.f32 1.442695, %v1606_v8  ;;  %v1624_v10 = vmul.f32 1.442695, %v1611_v6 }
 0x2fa   :  { %v1596_v11 = vpop.xlane.xlu1 %1595  ;;  %v1605_v12 = vpop.xlane.xlu0 %1604 }
 0x2fb   :  { %v1610_v13 = vsub.f32 %v1577_v56, %v1596_v11  ;;  %v1613_v14 = vsub.f32 %v1580_v57, %v1605_v12  ;;  %2955 = vpow2.f32 %v1614_v9 }
 0x2fc   :  { %2957 = vpow2.f32 %v1624_v10 }
 0x2fd   :  { %v1628_v20 = vmul.f32 1.442695, %v1613_v14  ;;  %v1622_v21 = vmul.f32 1.442695, %v1610_v13 }
 0x2fe   :  { %v886_v22 = vpop.permute.xlu1 %885  ;;  %v1602_v23 = vpop.xlane.xlu0 %1601 }
 0x2ff   :  { %v1612_v25 = vsub.f32 %v1579_v48, %v1602_v23  ;;  %2959 = vpow2.f32 %v1628_v20  ;;  %v973_v17 = vcombine.low %v874_v61, %v886_v22  ;;  %v974_v26 = vcombine.high %v874_v61, %v886_v22 }
 0x300   :  { %v3415_v15 = vpop.eup %2949  ;;  %2961 = vpow2.f32 %v1622_v21 }
 0x301   :  { %v1626_v27 = vmul.f32 1.442695, %v1612_v25  ;;  %v1633_v19 = vsel %vm1581_vm8, %v3415_v15, 0.0  ;;  %v981_v33 = vrot.slane %v973_v17, %v3260_v29  ;;  %v988_v35 = vrot.slane %v974_v26, %v3260_v29 }
 0x302   :  { %v880_v28 = vpop.permute.xlu0 %879  ;;  %1634 = vadd.xlane.f32.xlu1 %v1633_v19  ;;  %v872_v20 = vpop.permute.xlu1 %871 }
 0x303   :  { %2963 = vpow2.f32 %v1626_v27  ;;  %v957_v30 = vcombine.low %v3388_v7, %v880_v28  ;;  %v958_v31 = vcombine.high %v3388_v7, %v880_v28 }
 0x304   :  { %v3421_v32 = vpop.eup %2951 }
 0x305   :  { %v3424_v34 = vpop.eup %2953  ;;  %v965_v37 = vrot.slane %v957_v30, %v3260_v29  ;;  %v972_v38 = vrot.slane %v958_v31, %v3260_v29  ;;  %v1639_v39 = vsel %vm1581_vm8, %v3421_v32, 0.0 }
 0x306   :  { %1640 = vadd.xlane.f32.xlu0 %v1639_v39  ;;  %v1636_v43 = vsel %vm1581_vm8, %v3424_v34, 0.0 }
 0x307   :  { %v989_v18 = vcombine.low %v965_v37, %v981_v33  ;;  %v990_v40 = vcombine.high %v965_v37, %v981_v33  ;;  %v1005_v42 = vcombine.low %v972_v38, %v988_v35  ;;  %v1006_v7 = vcombine.high %v972_v38, %v988_v35 }
 0x308   :  { %v3433_v44 = vpop.eup %2955 }
 0x309   :  { %v997_v45 = vrot.slane %v989_v18, %v3263_v36  ;;  %v1004_v46 = vrot.slane %v990_v40, %v3263_v36  ;;  %v1013_v47 = vrot.slane %v1005_v42, %v3263_v36  ;;  %v1020_v52 = vrot.slane %v1006_v7, %v3263_v36  ;;  %v3441_v54 = vpop.eup %2957 }
 0x30a   :  { %1637 = vadd.xlane.f32.xlu0 %v1636_v43  ;;  %v1630_v53 = vsel %vm1581_vm8, %v3433_v44, 0.0  ;;  %v1645_v50 = vsel %vm1581_vm8, %v3441_v54, 0.0 }
 0x30b   :  { %v1093_v55 = vcombine.low %v997_v45, %v1004_v46  ;;  %v2707_v56 = vcombine.high %v997_v45, %v1004_v46  ;;  %v1109_v57 = vcombine.low %v1013_v47, %v1020_v52  ;;  %v2708_v58 = vcombine.high %v1013_v47, %v1020_v52  ;;  %1631 = vadd.xlane.f32.xlu1 %v1630_v53 }
 0x30c   :  { %v3443_v59 = vpop.eup %2959 }
 0x30d   :  { %v1100_v48 = vrot.slane %v1093_v55, %v3260_v29  ;;  %v1108_v49 = vrot.slane %v2707_v56, %v3260_v29  ;;  %v1116_v61 = vrot.slane %v1109_v57, %v3260_v29  ;;  %v1651_v62 = vsel %vm1581_vm8, %v3443_v59, 0.0  ;;  %v3453_v63 = vpop.eup %2961 }
 0x30e   :  { %v1124_v51 = vrot.slane %v2708_v58, %v3260_v29  ;;  %1652 = vadd.xlane.f32.xlu0 %v1651_v62  ;;  %v1642_v8 = vsel %vm1581_vm8, %v3453_v63, 0.0 }
 0x30f   :  { %1646 = vadd.xlane.f32.xlu1 %v1645_v50  ;;  %v1125_v0 = vcombine.low %v1100_v48, %v1108_v49  ;;  %v1126_v1 = vcombine.high %v1100_v48, %v1108_v49 }
 0x310   :  { %v3455_v2 = vpop.eup %2963  ;;  %v1141_v3 = vcombine.low %v1116_v61, %v1124_v51  ;;  %v1142_v16 = vcombine.high %v1116_v61, %v1124_v51 }
 0x311   :  { %v1648_v41 = vsel %vm1581_vm8, %v3455_v2, 0.0  ;;  %v1133_v5 = vrot.slane %v1125_v0, %v3263_v36  ;;  %v1140_v6 = vrot.slane %v1126_v1, %v3263_v36 }
 0x312   :  { %v1149_v9 = vrot.slane %v1141_v3, %v3263_v36  ;;  %v1156_v10 = vrot.slane %v1142_v16, %v3263_v36  ;;  %1649 = vadd.xlane.f32.xlu0 %v1648_v41 }
 0x313   :  { %1643 = vadd.xlane.f32.xlu1 %v1642_v8 }
 0x314   :  { %v1157_v11 = vcombine.low %v1133_v5, %v1149_v9  ;;  %v1158_v12 = vcombine.high %v1133_v5, %v1149_v9  ;;  %v3465_v13 = vcombine.low %v1140_v6, %v1156_v10  ;;  %v3467_v14 = vcombine.high %v1140_v6, %v1156_v10 }
 0x316   :  { %2860 = vmatprep.subr.mxu0 %v1157_v11  ;;  %2867 = vmatprep.subr.mxu1 %v1158_v12 }
 0x317   :  { %2861 = vmatpush3.msra.mxu0 %v1157_v11  ;;  %2868 = vmatpush3.msra.mxu1 %v1158_v12 }
 0x324   :  { %883 = vrot.lane.b32.xlu1 %v3409_v60, %s3112_s18 }
 0x328   :  { %877 = vrot.lane.b32.xlu0 %v3409_v60, %s3111_s17 }
 0x38b   :  { %v1635_v22 = vpop.xlane.xlu1 %1634 }
 0x38f   :  { %v1641_v21 = vpop.xlane.xlu0 %1640 }
 0x393   :  { %v1638_v23 = vpop.xlane.xlu0 %1637 }
 0x394   :  { %2965 = vrcp.f32 %v1638_v23  ;;  %v1632_v25 = vpop.xlane.xlu1 %1631 }
 0x395   :  { %2967 = vrcp.f32 %v1632_v25 }
 0x396   :  { %2969 = vrcp.f32 %v1635_v22 }
 0x397   :  { %v1653_v17 = vpop.xlane.xlu0 %1652  ;;  %2971 = vrcp.f32 %v1641_v21 }
 0x398   :  { %v1647_v26 = vpop.xlane.xlu1 %1646  ;;  %2973 = vrcp.f32 %v1653_v17 }
 0x39b   :  { %v1650_v27 = vpop.xlane.xlu0 %1649 }
 0x39c   :  { %v1644_v19 = vpop.xlane.xlu1 %1643 }
 0x39d   :  { %2975 = vrcp.f32 %v1644_v19 }
 0x39e   :  { %2977 = vrcp.f32 %v1650_v27 }
 0x39f   :  { %v878_v28 = vpop.permute.xlu0 %877  ;;  %2979 = vrcp.f32 %v1647_v26 }
 0x3a0   :  { %v884_v30 = vpop.permute.xlu1 %883  ;;  %v889_v33 = vcombine.low %v3409_v60, %v878_v28  ;;  %v890_v35 = vcombine.high %v3409_v60, %v878_v28 }
 0x3a1   :  { %v2966_v31 = vpop.eup %2965  ;;  %v905_v37 = vcombine.low %v872_v20, %v884_v30  ;;  %v906_v38 = vcombine.high %v872_v20, %v884_v30 }
 0x3a2   :  { %v2968_v39 = vpop.eup %2967  ;;  %v1664_v18 = vmul.f32 %v2966_v31, %v3424_v34  ;;  %v897_v40 = vrot.slane %v889_v33, %v3260_v29  ;;  %v904_v42 = vrot.slane %v890_v35, %v3260_v29 }
 0x3a3   :  { %v913_v7 = vrot.slane %v905_v37, %v3260_v29  ;;  %v920_v43 = vrot.slane %v906_v38, %v3260_v29  ;;  %v1662_v45 = vmul.f32 %v2968_v39, %v3433_v44  ;;  %v2970_v51 = vpop.eup %2969 }
 0x3a4   :  { %2871 = vmatprep.mubr.msk.f32.mxu1 %vm1581_vm8, %v1664_v18  ;;  %v2972_v0 = vpop.eup %2971  ;;  %v1663_v12 = vmul.f32 %v2970_v51, %v3415_v15 }
 0x3a5   :  { %v921_v60 = vcombine.low %v897_v40, %v913_v7  ;;  %v922_v46 = vcombine.high %v897_v40, %v913_v7  ;;  %v937_v47 = vcombine.low %v904_v42, %v920_v43  ;;  %v938_v52 = vcombine.high %v904_v42, %v920_v43  ;;  %2864 = vmatprep.mubr.msk.f32.mxu0 %vm1581_vm8, %v1662_v45  ;;  %v2974_v16 = vpop.eup %2973 }
 0x3a6   :  { %v1665_v21 = vmul.f32 %v2972_v0, %v3421_v32  ;;  %v1669_v27 = vmul.f32 %v2974_v16, %v3443_v59 }
 0x3a7   :  { %v929_v34 = vrot.slane %v921_v60, %v3263_v36  ;;  %v936_v53 = vrot.slane %v922_v46, %v3263_v36  ;;  %v945_v55 = vrot.slane %v937_v47, %v3263_v36  ;;  %v952_v56 = vrot.slane %v938_v52, %v3263_v36 }
 0x3a9   :  { %v1025_v57 = vcombine.low %v929_v34, %v936_v53  ;;  %v2705_v44 = vcombine.high %v929_v34, %v936_v53  ;;  %v1041_v58 = vcombine.low %v945_v55, %v952_v56  ;;  %v2706_v48 = vcombine.high %v945_v55, %v952_v56 }
 0x3aa   :  { %v2976_v9 = vpop.eup %2975 }
 0x3ab   :  { %v1032_v49 = vrot.slane %v1025_v57, %v3260_v29  ;;  %v1040_v61 = vrot.slane %v2705_v44, %v3260_v29  ;;  %v1048_v62 = vrot.slane %v1041_v58, %v3260_v29  ;;  %v1056_v50 = vrot.slane %v2706_v48, %v3260_v29  ;;  %v2978_v20 = vpop.eup %2977 }
 0x3ac   :  { %v2980_v25 = vpop.eup %2979  ;;  %v1666_v17 = vmul.f32 %v2976_v9, %v3453_v63  ;;  %v1668_v15 = vmul.f32 %v2978_v20, %v3455_v2 }
 0x3ad   :  { %v1057_v1 = vcombine.low %v1032_v49, %v1040_v61  ;;  %v1073_v3 = vcombine.low %v1048_v62, %v1056_v50  ;;  %v1058_v6 = vcombine.high %v1032_v49, %v1040_v61  ;;  %v1074_v8 = vcombine.high %v1048_v62, %v1056_v50 }
 0x3ae   :  { %v1667_v63 = vmul.f32 %v2980_v25, %v3441_v54 }
 0x3af   :  { %v1065_v41 = vrot.slane %v1057_v1, %v3263_v36  ;;  %v1081_v5 = vrot.slane %v1073_v3, %v3263_v36  ;;  %v1072_v22 = vrot.slane %v1058_v6, %v3263_v36  ;;  %v1088_v23 = vrot.slane %v1074_v8, %v3263_v36  ;;  %v2300_v8 = vld [vmem:[%s3630_s5 + $0x18] sm:$0xff] }
 0x3b1   :  { %v1089_v10 = vcombine.low %v1065_v41, %v1081_v5  ;;  %v1090_v11 = vcombine.high %v1065_v41, %v1081_v5  ;;  %v1091_v32 = vcombine.low %v1072_v22, %v1088_v23  ;;  %v1092_v26 = vcombine.high %v1072_v22, %v1088_v23 }
 0x3b3   :  { %2862 = vmatprep.subr.mxu0 %v1089_v10  ;;  %2869 = vmatprep.subr.mxu1 %v1090_v11 }
 0x3b4   :  { %2863 = vmatpush3.msra.mxu0 %v1089_v10  ;;  %2870 = vmatpush3.msra.mxu1 %v1090_v11 }
 0x3b5   :  { %2865 = vmatmul.mubr.msk.f32.vlgmr.msra.gmra.mxu0 %vm1581_vm8, %v1663_v12  ;;  %2872 = vmatmul.mubr.msk.f32.vlgmr.msra.gmra.mxu1 %vm1581_vm8, %v1665_v21 }
 0x3b6   :  { %2874 = vmatprep.subr.mxu0 %v3465_v13  ;;  %2881 = vmatprep.subr.mxu1 %v3467_v14 }
 0x3b7   :  { %2875 = vmatpush3.msra.mxu0 %v3465_v13  ;;  %2878 = vmatprep.mubr.msk.f32.mxu0 %vm1581_vm8, %v1666_v17 }
 0x3b8   :  { %2882 = vmatpush3.msra.mxu1 %v3467_v14  ;;  %2885 = vmatprep.mubr.msk.f32.mxu1 %vm1581_vm8, %v1668_v15 }
 0x3b9   :  { %2876 = vmatprep.subr.mxu0 %v1091_v32  ;;  %2883 = vmatprep.subr.mxu1 %v1092_v26 }
 0x3ba   :  { %2877 = vmatpush3.msra.mxu0 %v1091_v32  ;;  %2884 = vmatpush3.msra.mxu1 %v1092_v26  ;;  %v2299_v26 = vld [vmem:[%s3630_s5 + $0x10] sm:$0xff] }
 0x3bb   :  { %2879 = vmatmul.mubr.msk.f32.vlgmr.msra.gmra.mxu0 %vm1581_vm8, %v1667_v63  ;;  %2886 = vmatmul.mubr.msk.f32.vlgmr.msra.gmra.mxu1 %vm1581_vm8, %v1669_v27 }
 0x3bc   :  { %2888 = vmatprep.subr.mxu0 %v2300_v8 }
 0x3bd   :  { %2889 = vmatpush3.msra.mxu0 %v2300_v8 }
 0x3be   :  { %2890 = vmatprep.subr.mxu0 %v2299_v26 }
 0x3bf   :  { %2891 = vmatpush3.msra.mxu0 %v2299_v26  ;;  %v2529_v26 = vld [vmem:[%s3632_s7 + $0x20] sm:$0xff] }
 0x475   :  { %v2866_v2 = vpop.f32.mrf.mxu0  ;;  %v2873_v13 = vpop.f32.mrf.mxu1 }
 0x477   :  { %v1742_v19 = vpop.f32.mrf.mxu0  ;;  %v1823_v28 = vpop.f32.mrf.mxu1 }
 0x47b   :  { %v2880_v30 = vpop.f32.mrf.mxu0  ;;  %v2887_v14 = vpop.f32.mrf.mxu1 }
 0x47c   :  { %v2062_v31 = vcombine.low %v2866_v2, %v2880_v30  ;;  %v2063_v33 = vcombine.high %v2866_v2, %v2880_v30  ;;  %v2078_v35 = vcombine.low %v2873_v13, %v2887_v14  ;;  %v2079_v37 = vcombine.high %v2873_v13, %v2887_v14 }
 0x47d   :  { %v1904_v38 = vpop.f32.mrf.mxu0  ;;  %v1985_v54 = vpop.f32.mrf.mxu1 }
 0x47e   :  { %v2070_v59 = vrot.slane %v2062_v31, %v3260_v29  ;;  %v2077_v39 = vrot.slane %v2063_v33, %v3260_v29  ;;  %v2086_v18 = vrot.slane %v2078_v35, %v3260_v29  ;;  %v2093_v40 = vrot.slane %v2079_v37, %v3260_v29 }
 0x47f   :  { %v1994_v42 = vcombine.low %v1742_v19, %v1904_v38  ;;  %v1995_v7 = vcombine.high %v1742_v19, %v1904_v38  ;;  %v2010_v43 = vcombine.low %v1823_v28, %v1985_v54  ;;  %v2011_v45 = vcombine.high %v1823_v28, %v1985_v54  ;;  %v2298_v19 = vld [vmem:[%s3630_s5 + $0x8] sm:$0xff] }
 0x480   :  { %v2094_v60 = vcombine.low %v2070_v59, %v2086_v18  ;;  %v2095_v46 = vcombine.high %v2070_v59, %v2086_v18  ;;  %v2110_v47 = vcombine.low %v2077_v39, %v2093_v40  ;;  %v2111_v52 = vcombine.high %v2077_v39, %v2093_v40  ;;  %2892 = vmatprep.subr.mxu0 %v2298_v19  ;;  %v2297_v59 = vld [vmem:[%s3630_s5] sm:$0xff]  ;;  %s3118_s5 = smov 24  }
 0x481   :  { %v2002_v34 = vrot.slane %v1994_v42, %v3260_v29  ;;  %v2009_v53 = vrot.slane %v1995_v7, %v3260_v29  ;;  %v2018_v55 = vrot.slane %v2010_v43, %v3260_v29  ;;  %v2025_v56 = vrot.slane %v2011_v45, %v3260_v29  ;;  %2893 = vmatpush3.msra.mxu0 %v2298_v19 }
 0x482   :  { %v2102_v57 = vrot.slane %v2094_v60, %v3263_v36  ;;  %v2109_v44 = vrot.slane %v2095_v46, %v3263_v36  ;;  %v2118_v58 = vrot.slane %v2110_v47, %v3263_v36  ;;  %v2125_v48 = vrot.slane %v2111_v52, %v3263_v36  ;;  %2894 = vmatprep.subr.mxu0 %v2297_v59 }
 0x483   :  { %v2026_v49 = vcombine.low %v2002_v34, %v2018_v55  ;;  %v2027_v61 = vcombine.high %v2002_v34, %v2018_v55  ;;  %v2042_v62 = vcombine.low %v2009_v53, %v2025_v56  ;;  %v2043_v50 = vcombine.high %v2009_v53, %v2025_v56  ;;  %2895 = vmatpush3.msra.mxu0 %v2297_v59 }
 0x484   :  { %v2198_v51 = vcombine.low %v2102_v57, %v2109_v44  ;;  %v2735_v0 = vcombine.high %v2102_v57, %v2109_v44  ;;  %v2214_v1 = vcombine.low %v2118_v58, %v2125_v48  ;;  %v2736_v3 = vcombine.high %v2118_v58, %v2125_v48 }
 0x485   :  { %v2034_v16 = vrot.slane %v2026_v49, %v3263_v36  ;;  %v2041_v41 = vrot.slane %v2027_v61, %v3263_v36  ;;  %v2050_v5 = vrot.slane %v2042_v62, %v3263_v36  ;;  %v2057_v6 = vrot.slane %v2043_v50, %v3263_v36 }
 0x486   :  { %v2205_v9 = vrot.slane %v2198_v51, %v3260_v29  ;;  %v2213_v10 = vrot.slane %v2735_v0, %v3260_v29  ;;  %v2221_v11 = vrot.slane %v2214_v1, %v3260_v29  ;;  %v2229_v12 = vrot.slane %v2736_v3, %v3260_v29  ;;  %v2989_v3 = vld [vmem:[#allocation2 + $0x8] sm:$0xff] }
 0x487   :  { %v2130_v20 = vcombine.low %v2034_v16, %v2041_v41  ;;  %v2733_v21 = vcombine.high %v2034_v16, %v2041_v41  ;;  %v2146_v22 = vcombine.low %v2050_v5, %v2057_v6  ;;  %v2734_v23 = vcombine.high %v2050_v5, %v2057_v6  ;;  %v2990_v5 = vld [vmem:[#allocation2] sm:$0xff] }
 0x488   :  { %v2230_v25 = vcombine.low %v2205_v9, %v2213_v10  ;;  %v2246_v17 = vcombine.low %v2221_v11, %v2229_v12  ;;  %v2231_v15 = vcombine.high %v2205_v9, %v2213_v10  ;;  %v2247_v32 = vcombine.high %v2221_v11, %v2229_v12 }
 0x489   :  { %v2137_v63 = vrot.slane %v2130_v20, %v3260_v29  ;;  %v2145_v27 = vrot.slane %v2733_v21, %v3260_v29  ;;  %v2153_v2 = vrot.slane %v2146_v22, %v3260_v29  ;;  %v2161_v13 = vrot.slane %v2734_v23, %v3260_v29  ;;  %v2434_v21 = vld [vmem:[#allocation7 + $0x18] sm:$0xff]  ;;  %v2433_v22 = vld [vmem:[#allocation7 + $0x10] sm:$0xff]  ;;  %v2432_v23 = vld [vmem:[#allocation7 + $0x8] sm:$0xff] }
 0x48a   :  { %v2238_v28 = vrot.slane %v2230_v25, %v3263_v36  ;;  %v2254_v30 = vrot.slane %v2246_v17, %v3263_v36  ;;  %v2245_v54 = vrot.slane %v2231_v15, %v3263_v36  ;;  %v2261_v29 = vrot.slane %v2247_v32, %v3263_v36  ;;  %2899 = vmatprep.subr.mxu1 %v2434_v21  ;;  %v2431_v25 = vld [vmem:[#allocation7] sm:$0xff]  ;;  %v2532_v17 = vld [vmem:[%s3632_s7 + $0x38] sm:$0xff]  ;;  %v2531_v15 = vld [vmem:[%s3632_s7 + $0x30] sm:$0xff] }
 0x48b   :  { %v2162_v14 = vcombine.low %v2137_v63, %v2145_v27  ;;  %v2178_v31 = vcombine.low %v2153_v2, %v2161_v13  ;;  %v2163_v33 = vcombine.high %v2137_v63, %v2145_v27  ;;  %v2179_v35 = vcombine.high %v2153_v2, %v2161_v13  ;;  %2900 = vmatpush3.msra.mxu1 %v2434_v21  ;;  %v2530_v32 = vld [vmem:[%s3632_s7 + $0x28] sm:$0xff] }
 0x48c   :  { %v2263_v37 = vcombine.high %v2238_v28, %v2254_v30  ;;  %v2262_v38 = vcombine.low %v2238_v28, %v2254_v30  ;;  %v2264_v45 = vcombine.low %v2245_v54, %v2261_v29  ;;  %v2265_v46 = vcombine.high %v2245_v54, %v2261_v29  ;;  %2901 = vmatprep.subr.mxu1 %v2433_v22 }
 0x48d   :  { %v2170_v39 = vrot.slane %v2162_v14, %v3263_v36  ;;  %v2186_v18 = vrot.slane %v2178_v31, %v3263_v36  ;;  %v2177_v7 = vrot.slane %v2163_v33, %v3263_v36  ;;  %v2193_v43 = vrot.slane %v2179_v35, %v3263_v36  ;;  %2902 = vmatpush3.msra.mxu1 %v2433_v22 }
 0x48e   :  { %2270 = vrot.lane.b32.xlu1 %v2263_v37, %s3103_s23  ;;  %v2303_v62 = vsub.s32 1, %v3257_v24  ;;  %2903 = vmatprep.subr.mxu1 %v2432_v23  ;;  %v2421_v29 = vsub.s32 3, %v3257_v24  ;;  %v2427_v59 = vsub.s32 4, %v3257_v24 }
 0x48f   :  { %v2195_v40 = vcombine.high %v2170_v39, %v2186_v18  ;;  %v2194_v42 = vcombine.low %v2170_v39, %v2186_v18  ;;  %v2196_v60 = vcombine.low %v2177_v7, %v2193_v43  ;;  %v2197_v47 = vcombine.high %v2177_v7, %v2193_v43  ;;  %2904 = vmatpush3.msra.mxu1 %v2432_v23 }
 0x490   :  { %v2304_v50 = vrot.slane %v3382_v4, %v2303_v62  ;;  %2905 = vmatprep.subr.mxu1 %v2431_v25  ;;  %2910 = vmatprep.subr.mxu0 %v2532_v17  ;;  %v2422_v18 = vrot.slane %v3382_v4, %v2421_v29  ;;  %v2428_v7 = vrot.slane %v3382_v4, %v2427_v59 }
 0x491   :  { %2268 = vrot.lane.b32.xlu0 %v2195_v40, %s3103_s23  ;;  %2906 = vmatpush3.msra.mxu1 %v2431_v25 }
 0x492   :  { %2278 = vrot.lane.b32.xlu1 %v2264_v45, %s3117_s28 }
 0x495   :  { %2276 = vrot.lane.b32.xlu0 %v2196_v60, %s3117_s28 }
 0x496   :  { %2286 = vrot.lane.b32.xlu1 %v2265_v46, %s3118_s5 }
 0x499   :  { %2284 = vrot.lane.b32.xlu0 %v2197_v47, %s3118_s5 }
 0x500   :  { %v2271_v52 = vpop.permute.xlu1 %2270 }
 0x501   :  { %v2291_v57 = vsel %vm1216_vm1, %v2262_v38, %v2271_v52 }
 0x503   :  { %v2269_v34 = vpop.permute.xlu0 %2268 }
 0x504   :  { %v2279_v53 = vpop.permute.xlu1 %2278  ;;  %v2290_v56 = vsel %vm1216_vm1, %v2194_v42, %v2269_v34 }
 0x505   :  { %v2293_v48 = vsel %vm1581_vm8, %v2291_v57, %v2279_v53  ;;  %v2528_v53 = vld [vmem:[%s3632_s7 + $0x18] sm:$0xff]  ;;  %v2739_v57 = vld [vmem:[%s3634_s9] ss:$0 sm:$0xff] }
 0x507   :  { %v2277_v55 = vpop.permute.xlu0 %2276 }
 0x508   :  { %v2287_v36 = vpop.permute.xlu1 %2286  ;;  %v2292_v44 = vsel %vm1581_vm8, %v2290_v56, %v2277_v55  ;;  %v2527_v55 = vld [vmem:[%s3632_s7 + $0x10] sm:$0xff]  ;;  %v2526_v56 = vld [vmem:[%s3632_s7 + $0x8] sm:$0xff] }
 0x509   :  { %v2296_v61 = vsel %vm2294_vm9, %v2293_v48, %v2287_v36  ;;  %v2525_v36 = vld [vmem:[%s3632_s7] sm:$0xff]  ;;  %s3119_s7 = smov [#allocation10]  }
 0x50a   :  { %s2670_s9 = sshll.u32 %s3119_s7, 4  ;;  %s2671_s9 = int_to_ptr.vmem [resolvable:$true] %s2670_s9 }
 0x50b   :  { %v2285_v58 = vpop.permute.xlu0 %2284  ;;  %s3072_s10 = scalar_lea.vmem %s2671_s9, 256  ;;  %p3077_p7 = scmp.lt.s32.totalorder %s2671_s9, %s2671_s9 }
 0x50c   :  { %v2295_v49 = vsel %vm2294_vm9, %v2292_v44, %v2285_v58  ;;  %p3073_p6 = scmp.ne.s32.totalorder %s2671_s9, %s3072_s10  ;;  %p3078_p8 = scmp.lt.s32.totalorder %s3072_s10, %s3072_s10 }
 0x50d   :  { %2896 = vmatprep.mubr.msk.f32.mxu0 %vm110_vm0, %v2295_v49 }
 0x50e   :  { %2897 = vmatmul.mubr.msk.f32.vlgmr.msra.gmra.mxu0 %vm110_vm0, %v2296_v61  ;;  %p3079_p9 = por %p3078_p8, %p3077_p7 }
 0x50f   :  { %2911 = vmatpush3.msra.mxu0 %v2532_v17 }
 0x510   :  { %2912 = vmatprep.subr.mxu0 %v2531_v15  ;;  %p3080_p10 = pnand %p3079_p9, %p3073_p6 }
 0x511   :  { %2913 = vmatpush3.msra.mxu0 %v2531_v15 }
 0x512   :  { %2914 = vmatprep.subr.mxu0 %v2530_v32 }
 0x513   :  { %2915 = vmatpush3.msra.mxu0 %v2530_v32 }
 0x514   :  { %2916 = vmatprep.subr.mxu0 %v2529_v26 }
 0x515   :  { %2917 = vmatpush3.msra.mxu0 %v2529_v26 }
 0x516   :  { %2918 = vmatprep.subr.mxu0 %v2528_v53 }
 0x517   :  { %2919 = vmatpush3.msra.mxu0 %v2528_v53 }
 0x518   :  { %2920 = vmatprep.subr.mxu0 %v2527_v55 }
 0x519   :  { %2921 = vmatpush3.msra.mxu0 %v2527_v55 }
 0x51a   :  { %2922 = vmatprep.subr.mxu0 %v2526_v56 }
 0x51b   :  { %2923 = vmatpush3.msra.mxu0 %v2526_v56 }
 0x51c   :  { %2924 = vmatprep.subr.mxu0 %v2525_v36 }
 0x51d   :  { %2925 = vmatpush3.msra.mxu0 %v2525_v36 }
 0x5ce   :  { %v2898_v51 = vpop.f32.mrf.mxu0 }
 0x5cf   :  { %v2383_v0 = vadd.f32 %v2898_v51, %v2304_v50 }
 0x5d0   :  { %v2377_v1 = vpop.f32.mrf.mxu0 }
 0x5d1   :  { %v3565_v16 = vadd.f32 %v2989_v3, %v2383_v0  ;;  %v2378_v41 = vadd.f32 %v2377_v1, %v2304_v50  ;;  %v2535_v50 = vsub.s32 2, %v3257_v24 }
 0x5d3   :  { %v2386_v6 = vadd.f32 %v2990_v5, %v2378_v41  ;;  %v2391_v8 = vsel %vm110_vm0, %v3565_v16, 0.0  ;;  %v2398_v12 = vmul.f32 %v3565_v16, %v3565_v16  ;;  %v2536_v51 = vrot.slane %v3382_v4, %v2535_v50 }
 0x5d4   :  { %2392 = vadd.xlane.f32.xlu1 %v2391_v8 }
 0x5d5   :  { %v2388_v9 = vsel %vm110_vm0, %v2386_v6, 0.0  ;;  %v2397_v10 = vmul.f32 %v2386_v6, %v2386_v6  ;;  %v2402_v20 = vsel %vm110_vm0, %v2398_v12, 0.0 }
 0x5d6   :  { %2389 = vadd.xlane.f32.xlu0 %v2388_v9 }
 0x5d7   :  { %v2399_v11 = vsel %vm110_vm0, %v2397_v10, 0.0 }
 0x5da   :  { %2400 = vadd.xlane.f32.xlu0 %v2399_v11 }
 0x5de   :  { %2403 = vadd.xlane.f32.xlu0 %v2402_v20 }
 0x65d   :  { %v2393_v2 = vpop.xlane.xlu1 %2392 }
 0x65e   :  { %v2396_v19 = vmul.f32 0.03125, %v2393_v2 }
 0x65f   :  { %v2390_v63 = vpop.xlane.xlu0 %2389 }
 0x660   :  { %v2395_v27 = vmul.f32 0.03125, %v2390_v63  ;;  %v2408_v33 = vmul.f32 %v2396_v19, %v2396_v19  ;;  %v2412_v43 = vsub.f32 %v3565_v16, %v2396_v19 }
 0x662   :  { %v2407_v28 = vmul.f32 %v2395_v27, %v2395_v27  ;;  %v2411_v39 = vsub.f32 %v2386_v6, %v2395_v27 }
 0x663   :  { %v2401_v13 = vpop.xlane.xlu0 %2400 }
 0x664   :  { %v2405_v30 = vmul.f32 0.03125, %v2401_v13 }
 0x666   :  { %v2409_v14 = vsub.f32 %v2405_v30, %v2407_v28  ;;  %v2653_v28 = vsub.s32 5, %v3257_v24  ;;  %v2659_v30 = vsub.s32 6, %v3257_v24 }
 0x667   :  { %v2404_v31 = vpop.xlane.xlu0 %2403 }
 0x668   :  { %v2413_v35 = vadd.f32 1e-05, %v2409_v14  ;;  %v2406_v37 = vmul.f32 0.03125, %v2404_v31  ;;  %v2654_v31 = vrot.slane %v3382_v4, %v2653_v28 }
 0x66a   :  { %2981 = vrsqrt.f32 %v2413_v35  ;;  %v2410_v38 = vsub.f32 %v2406_v37, %v2408_v33 }
 0x66c   :  { %v2414_v54 = vadd.f32 1e-05, %v2410_v38  ;;  %v2991_v38 = vld [vmem:[#allocation8] sm:$0xff] }
 0x66e   :  { %2983 = vrsqrt.f32 %v2414_v54  ;;  %v2660_v54 = vrot.slane %v2991_v38, %v2659_v30 }
 0x677   :  { %v2982_v40 = vpop.eup %2981 }
 0x678   :  { %v2417_v42 = vmul.f32 %v2982_v40, %v2411_v39 }
 0x67a   :  { %v2423_v45 = vmul.f32 %v2422_v18, %v2417_v42 }
 0x67b   :  { %v2984_v60 = vpop.eup %2983 }
 0x67c   :  { %v2418_v46 = vmul.f32 %v2984_v60, %v2412_v43  ;;  %v2429_v47 = vadd.f32 %v2428_v7, %v2423_v45 }
 0x67e   :  { %v2424_v52 = vmul.f32 %v2422_v18, %v2418_v46  ;;  %2907 = vmatprep.mubr.msk.f32.mxu1 %vm110_vm0, %v2429_v47 }
 0x680   :  { %v2430_v34 = vadd.f32 %v2428_v7, %v2424_v52 }
 0x682   :  { %2908 = vmatmul.mubr.msk.f32.vlgmr.msra.gmra.mxu1 %vm110_vm0, %v2430_v34 }
 0x742   :  { %v2909_v44 = vpop.f32.mrf.mxu1 }
 0x743   :  { %v2520_v58 = vadd.f32 %v2909_v44, %v2739_v57 }
 0x744   :  { %v2514_v48 = vpop.f32.mrf.mxu1 }
 0x745   :  { %v2515_v49 = vadd.f32 %v2739_v57, %v2514_v48  ;;  %v2524_v62 = vmax.f32 %v2520_v58, 0.0 }
 0x747   :  { %v2523_v61 = vmax.f32 %v2515_v49, 0.0 }
 0x749   :  { %2926 = vmatprep.mubr.msk.f32.mxu0 %vm2537_vm10, %v2523_v61 }
 0x74a   :  { %2927 = vmatmul.mubr.msk.f32.vlgmr.msra.gmra.mxu0 %vm2537_vm10, %v2524_v62 }
 0x80a   :  { %v2928_v0 = vpop.f32.mrf.mxu0 }
 0x80b   :  { %v2616_v1 = vadd.f32 %v2928_v0, %v2536_v51 }
 0x80c   :  { %v2610_v3 = vpop.f32.mrf.mxu0 }
 0x80d   :  { %v2620_v16 = vadd.f32 %v2616_v1, %v2430_v34  ;;  %v2611_v41 = vadd.f32 %v2610_v3, %v2536_v51 }
 0x80f   :  { %v2619_v5 = vadd.f32 %v2611_v41, %v2429_v47  ;;  %v2624_v6 = vsel %vm110_vm0, %v2620_v16, 0.0  ;;  %v2630_v8 = vmul.f32 %v2620_v16, %v2620_v16 }
 0x810   :  { %2625 = vadd.xlane.f32.xlu0 %v2624_v6 }
 0x811   :  { %v2621_v9 = vsel %vm110_vm0, %v2619_v5, 0.0  ;;  %v2629_v10 = vmul.f32 %v2619_v5, %v2619_v5  ;;  %v2634_v11 = vsel %vm110_vm0, %v2630_v8, 0.0 }
 0x812   :  { %2622 = vadd.xlane.f32.xlu1 %v2621_v9 }
 0x813   :  { %v2631_v12 = vsel %vm110_vm0, %v2629_v10, 0.0 }
 0x814   :  { %2635 = vadd.xlane.f32.xlu0 %v2634_v11 }
 0x816   :  { %2632 = vadd.xlane.f32.xlu1 %v2631_v12 }
 0x899   :  { %v2626_v20 = vpop.xlane.xlu0 %2625 }
 0x89a   :  { %v2628_v21 = vmul.f32 0.03125, %v2626_v20 }
 0x89b   :  { %v2623_v22 = vpop.xlane.xlu1 %2622 }
 0x89c   :  { %v2627_v23 = vmul.f32 0.03125, %v2623_v22  ;;  %v2640_v17 = vmul.f32 %v2628_v21, %v2628_v21  ;;  %v2644_v14 = vsub.f32 %v2620_v16, %v2628_v21 }
 0x89d   :  { %v2636_v25 = vpop.xlane.xlu0 %2635 }
 0x89e   :  { %v2638_v15 = vmul.f32 0.03125, %v2636_v25  ;;  %v2639_v26 = vmul.f32 %v2627_v23, %v2627_v23  ;;  %v2643_v35 = vsub.f32 %v2619_v5, %v2627_v23 }
 0x89f   :  { %v2633_v32 = vpop.xlane.xlu1 %2632 }
 0x8a0   :  { %v2642_v63 = vsub.f32 %v2638_v15, %v2640_v17  ;;  %v2637_v27 = vmul.f32 0.03125, %v2633_v32 }
 0x8a2   :  { %v2646_v2 = vadd.f32 1e-05, %v2642_v63  ;;  %v2641_v13 = vsub.f32 %v2637_v27, %v2639_v26 }
 0x8a4   :  { %2985 = vrsqrt.f32 %v2646_v2  ;;  %v2645_v19 = vadd.f32 1e-05, %v2641_v13 }
 0x8a6   :  { %2987 = vrsqrt.f32 %v2645_v19 }
 0x8b1   :  { %v2986_v33 = vpop.eup %2985 }
 0x8b2   :  { %v2650_v37 = vmul.f32 %v2986_v33, %v2644_v14 }
 0x8b3   :  { %v2988_v29 = vpop.eup %2987 }
 0x8b4   :  { %v2649_v59 = vmul.f32 %v2988_v29, %v2643_v35  ;;  %v2656_v39 = vmul.f32 %v2654_v31, %v2650_v37 }
 0x8b6   :  { %v2655_v18 = vmul.f32 %v2654_v31, %v2649_v59  ;;  %v2662_v40 = vadd.f32 %v2660_v54, %v2656_v39 }
 0x8b8   :  { %v2661_v42 = vadd.f32 %v2660_v54, %v2655_v18  ;;  %2664 = vst.msk [vmem:[#allocation10 + $0x8] sm:$0xff] %vm110_vm0, %v2662_v40 }
 0x8ba   :  { %2663 = vst.msk [vmem:[#allocation10] sm:$0xff] %vm110_vm0, %v2661_v42 }
 0x8bb   :  { %3083 = shalt.err (!%p3080_p10)
}
 0x8bc   :  { %2676 = dma.vmem_to_hbm [thread:$0]  %s2671_s9, 256, %s3636_s11, [#allocation4], %s3102_s22, %s3102_s22, %s3103_s23  }
 0x8bd   :  { %3098 = dma.done.wait [#allocation4], 256  }
 0x8be   :  { %3099 = vsyncadd [#allocation4], 4294967040 }
 0x8bf   :  { %2680 = vsyncpa [#allocation3], 1 }
 0x8c0   :  { %2681 = vsyncpa [#allocation6], 1 }
 0x8c1   :  { %2682 = vsyncpa [#allocation9], 1 }
 0x8c2   :  { %2683 = vsyncpa [#allocation4], 1 }

</bundles_post_ra>
